<compile_context>
chip_gen: v5e
topology: v5e:2x2
jax: 0.10.0
libtpu: 0.0.40
codegen_flags: <defaults>
</compile_context>

<pallas_src>
import functools
import math

import jax
import jax.numpy as jnp
from jax.experimental import pallas as pl
from jax.experimental.pallas import tpu as pltpu

_VMEM_LIMIT = 48 * 1024 * 1024   # headroom under v7x's 64 MiB physical VMEM


# ----------------------------- tiling helpers --------------------------------

def _pick_lane_tile(dim):
    """Tile for a dim that appears as a block's LAST dim (must be %128 or full).

    Prefers 256-aligned tiles (v6e/v7x MXU is 2x256x256)."""
    for c in (1024, 512, 256, 128):
        if dim % c == 0:
            return c
    # TODO(synk): pad sub-128 dims to lane-dense multiples of 128 instead of
    # falling back to the (possibly tiny) full dim.
    return dim


def _pick_sublane_tile(dim):
    """Tile for a dim that only appears as second-to-last (must be %8 or full)."""
    for c in (512, 256, 128, 64, 32, 16, 8):
        if dim % c == 0:
            return c
    return dim


# ------------------------------ GEMM kernels ----------------------------------

def _linear_kernel(x_ref, w_ref, b_ref, o_ref, acc_ref, *, activation):
    @pl.when(pl.program_id(2) == 0)
    def _():
        acc_ref[...] = jnp.zeros_like(acc_ref)

    acc_ref[...] += jnp.dot(x_ref[...], w_ref[...],
                            preferred_element_type=jnp.float32)

    @pl.when(pl.program_id(2) == pl.num_programs(2) - 1)
    def _():
        y = acc_ref[...] + b_ref[...]              # f32 epilogue (v5e-friendly)
        if activation == "relu":
            y = jnp.maximum(y, 0.0)
        o_ref[...] = y.astype(o_ref.dtype)


def _linear_ln_kernel(x_ref, w_ref, b_ref, res_ref, g_ref, bb_ref, o_ref,
                      acc_ref, *, eps):
    """Tiled GEMM with fused `LayerNorm(residual + x @ w + b)` epilogue."""
    @pl.when(pl.program_id(2) == 0)
    def _():
        acc_ref[...] = jnp.zeros_like(acc_ref)

    acc_ref[...] += jnp.dot(x_ref[...], w_ref[...],
                            preferred_element_type=jnp.float32)

    @pl.when(pl.program_id(2) == pl.num_programs(2) - 1)
    def _():
        y = acc_ref[...] + b_ref[...] + res_ref[...].astype(jnp.float32)
        mean = jnp.mean(y, axis=-1, keepdims=True)
        yc = y - mean
        var = jnp.mean(yc * yc, axis=-1, keepdims=True)
        y = yc * jax.lax.rsqrt(var + eps) * g_ref[...] + bb_ref[...]
        o_ref[...] = y.astype(o_ref.dtype)


def linear(x, w, b, *, activation=None, residual=None, ln_gamma=None,
           ln_beta=None, ln_eps=1e-5, out_dtype=jnp.bfloat16):
    """(M, K) bf16 @ (K, N) bf16 + (N,) f32 -> (M, N); f32 accumulation.

    If residual / ln_gamma / ln_beta are given, the whole output row stays in
    the final block (tn == N) and LayerNorm(residual + y) is fused into the
    k-axis finalize, eliminating a separate LN kernel and its HBM traffic.
    """
    M, K = x.shape
    N = w.shape[1]
    fuse_ln = ln_gamma is not None
    tm = _pick_sublane_tile(M)
    tk = _pick_lane_tile(K)
    tn = N if fuse_ln else _pick_lane_tile(N)
    grid = (M // tm, N // tn, K // tk)

    x_spec = pl.BlockSpec((tm, tk), lambda i, j, k: (i, k))
    w_spec = pl.BlockSpec((tk, tn), lambda i, j, k: (k, j))
    b_spec = pl.BlockSpec((1, tn), lambda i, j, k: (0, j))
    out_spec = pl.BlockSpec((tm, tn), lambda i, j, k: (i, j))
    params = pltpu.CompilerParams(
        dimension_semantics=("parallel", "parallel", "arbitrary"),
        vmem_limit_bytes=_VMEM_LIMIT)

    if fuse_ln:
        kern = functools.partial(_linear_ln_kernel, eps=ln_eps)
        in_specs = [x_spec, w_spec, b_spec,
                    pl.BlockSpec((tm, N), lambda i, j, k: (i, 0)),
                    pl.BlockSpec((1, N), lambda i, j, k: (0, 0)),
                    pl.BlockSpec((1, N), lambda i, j, k: (0, 0))]
        args = (x, w, b.reshape(1, N).astype(jnp.float32), residual,
                ln_gamma.reshape(1, N), ln_beta.reshape(1, N))
    else:
        kern = functools.partial(_linear_kernel, activation=activation)
        in_specs = [x_spec, w_spec, b_spec]
        args = (x, w, b.reshape(1, N).astype(jnp.float32))

    return pl.pallas_call(
        kern,
        out_shape=jax.ShapeDtypeStruct((M, N), out_dtype),
        grid=grid,
        in_specs=in_specs,
        out_specs=out_spec,
        scratch_shapes=[pltpu.VMEM((tm, tn), jnp.float32)],
        compiler_params=params,
    )(*args)


# ------------------------------ attention kernel ------------------------------

def _attn_kernel(q_ref, kv_ref, cq_ref, sq_ref, ck_ref, sk_ref, o_ref, *,
                 causal, num_heads, scale):
    Sq, D = q_ref.shape[1], q_ref.shape[2]
    Sk = kv_ref.shape[1]
    hd = D // num_heads
    half = hd // 2

    def rope(x, cos, sin):
        # rotate-half within each head of the merged (S, D) slab; the cos/sin
        # multiplies are done ONCE for all heads.
        # TODO(synk): for hd >= 128, use pltpu.roll on an (S, nh, hd) view plus
        # a +-1 mask to move the shuffle to the XLU slot.
        parts = []
        for h in range(num_heads):
            base = h * hd
            parts.append(-x[:, base + half:base + hd])
            parts.append(x[:, base:base + half])
        return x * cos + jnp.concatenate(parts, axis=-1) * sin

    kv = kv_ref[0]                                        # (Sk, 2D) bf16
    q = rope(q_ref[0].astype(jnp.float32), cq_ref[...], sq_ref[...])
    k = rope(kv[:, :D].astype(jnp.float32), ck_ref[...], sk_ref[...])
    q = q.astype(jnp.bfloat16)
    k = k.astype(jnp.bfloat16)
    v = kv[:, D:]

    if causal:
        # mask built once (not per head); offset accounts for the Sq grid tile.
        q0 = pl.program_id(1) * Sq
        row = q0 + jax.lax.broadcasted_iota(jnp.int32, (Sq, Sk), 0)
        col = jax.lax.broadcasted_iota(jnp.int32, (Sq, Sk), 1)
        masked = col > row

    nt = (((1,), (1,)), ((), ()))                 # contract last dims: q . k^T
    for h in range(num_heads):
        lo, hi = h * hd, (h + 1) * hd
        s = jax.lax.dot_general(q[:, lo:hi], k[:, lo:hi], nt,
                                preferred_element_type=jnp.float32) * scale
        if causal:
            s = jnp.where(masked, -1e30, s)       # large finite, not -inf
        m = jnp.max(s, axis=-1, keepdims=True)
        p = jnp.exp(s - m)
        denom = jnp.sum(p, axis=-1, keepdims=True)
        attn = (p * pl.reciprocal(denom, approx=True)).astype(jnp.bfloat16)
        ctx = jnp.dot(attn, v[:, lo:hi], preferred_element_type=jnp.float32)
        o_ref[0, :, lo:hi] = ctx.astype(o_ref.dtype)   # direct lane-slab store


def attention(q, kv, cos, sin, *, causal, num_heads):
    """q: (B, Sq, D) merged-head bf16; kv: (B, Sk, 2D) = [K | V] bf16.

    cos/sin: (S, D) RoPE caches already tiled across heads (S >= Sq, Sk).
    TODO(synk): flash-style streaming-softmax over kv tiles for long S.
    """
    B, Sq, D = q.shape
    _, Sk, _ = kv.shape
    hd = D // num_heads
    tq = _pick_sublane_tile(Sq)
    kern = functools.partial(_attn_kernel, causal=causal, num_heads=num_heads,
                             scale=1.0 / math.sqrt(hd))
    return pl.pallas_call(
        kern,
        out_shape=jax.ShapeDtypeStruct((B, Sq, D), jnp.bfloat16),
        grid=(B, Sq // tq),
        in_specs=[pl.BlockSpec((1, tq, D), lambda b, i: (b, i, 0)),
                  pl.BlockSpec((1, Sk, 2 * D), lambda b, i: (b, 0, 0)),
                  pl.BlockSpec((tq, D), lambda b, i: (i, 0)),   # cos for Q rows
                  pl.BlockSpec((tq, D), lambda b, i: (i, 0)),   # sin for Q rows
                  pl.BlockSpec((Sk, D), lambda b, i: (0, 0)),   # cos for K rows
                  pl.BlockSpec((Sk, D), lambda b, i: (0, 0))],  # sin for K rows
        out_specs=pl.BlockSpec((1, tq, D), lambda b, i: (b, i, 0)),
        compiler_params=pltpu.CompilerParams(
            dimension_semantics=("parallel", "parallel"),
            vmem_limit_bytes=_VMEM_LIMIT),
    )(q, kv, cos, sin, cos, sin)


# -------------------------------- MoE kernel ----------------------------------

def _moe_kernel(x_ref, comb_ref, w1_ref, b1_ref, w2_ref, b2_ref, g_ref, bb_ref,
                o_ref, acc_ref, *, eps):
    """One (token-tile, expert, d_ff-tile) step of the dense MoE:

        acc += comb[:, e] * (relu(x @ w1[e,:,f] + b1[e,f]) @ w2[e,f,:])

    Expert bias b2[e] is added once (at f == 0) and the finalize fuses
    LayerNorm(x + acc). Only ONE expert/d_ff weight tile is resident
    (double-buffered) at a time, so VMEM use is independent of num_experts.
    """
    e = pl.program_id(1)
    f = pl.program_id(2)

    @pl.when((e == 0) & (f == 0))
    def _():
        acc_ref[...] = jnp.zeros_like(acc_ref)

    x = x_ref[...]                                           # (tm, D) bf16
    h = jnp.dot(x, w1_ref[...], preferred_element_type=jnp.float32) + b1_ref[...]
    h = jnp.maximum(h, 0.0).astype(jnp.bfloat16)
    y = jnp.dot(h, w2_ref[...], preferred_element_type=jnp.float32)
    y = y + jnp.where(f == 0, b2_ref[...], 0.0)

    comb = comb_ref[...]                                     # (tm, E) f32
    lane = jax.lax.broadcasted_iota(jnp.int32, comb.shape, 1)
    gate = jnp.sum(jnp.where(lane == e, comb, 0.0), axis=-1, keepdims=True)
    acc_ref[...] += gate * y

    @pl.when((e == pl.num_programs(1) - 1) & (f == pl.num_programs(2) - 1))
    def _():
        t = acc_ref[...] + x_ref[...].astype(jnp.float32)    # residual = MoE input
        mean = jnp.mean(t, axis=-1, keepdims=True)
        tc = t - mean
        var = jnp.mean(tc * tc, axis=-1, keepdims=True)
        o_ref[...] = (tc * jax.lax.rsqrt(var + eps) * g_ref[...]
                      + bb_ref[...]).astype(o_ref.dtype)


def moe_forward(p, x, ln, cfg):
    """y = LayerNorm(x + MoE(x)); dense all-expert compute with top-k combine
    weights (zero for unselected experts), fully fused into one Pallas kernel."""
    B, S, D = x.shape
    T = B * S
    E = cfg["num_experts"]
    F = p["w1"].shape[-1]
    xf = x.reshape(T, D)

    # Gating (tiny (T, E) math) stays in XLA: exact softmax/top-k, and no
    # lane-sparse Pallas launch for a 4..8-wide output.
    # TODO(synk): true top-k routing (token-sorted grouped matmul via
    # PrefetchScalarGridSpec) instead of dense all-expert compute.
    logits = jnp.dot(xf.astype(jnp.float32), p["gate_w"]) + p["gate_b"]
    probs = jax.nn.softmax(logits, axis=-1)
    topk_p, topk_i = jax.lax.top_k(probs, cfg["top_k"])
    topk_p = topk_p / jnp.sum(topk_p, axis=-1, keepdims=True)
    comb = jnp.einsum("tk,tke->te", topk_p,
                      jax.nn.one_hot(topk_i, E, dtype=topk_p.dtype))  # (T, E)

    tm = _pick_sublane_tile(T)
    tf = _pick_lane_tile(F)
    out = pl.pallas_call(
        functools.partial(_moe_kernel, eps=1e-5),
        out_shape=jax.ShapeDtypeStruct((T, D), jnp.bfloat16),
        grid=(T // tm, E, F // tf),
        in_specs=[
            pl.BlockSpec((tm, D), lambda i, e, f: (i, 0)),           # x (+residual)
            pl.BlockSpec((tm, E), lambda i, e, f: (i, 0)),           # combine wts
            pl.BlockSpec((None, D, tf), lambda i, e, f: (e, 0, f)),  # w1[e]
            pl.BlockSpec((None, 1, tf), lambda i, e, f: (e, 0, f)),  # b1[e]
            pl.BlockSpec((None, tf, D), lambda i, e, f: (e, f, 0)),  # w2[e]
            pl.BlockSpec((None, 1, D), lambda i, e, f: (e, 0, 0)),   # b2[e]
            pl.BlockSpec((1, D), lambda i, e, f: (0, 0)),            # ln gamma
            pl.BlockSpec((1, D), lambda i, e, f: (0, 0)),            # ln beta
        ],
        out_specs=pl.BlockSpec((tm, D), lambda i, e, f: (i, 0)),
        scratch_shapes=[pltpu.VMEM((tm, D), jnp.float32)],
        compiler_params=pltpu.CompilerParams(
            dimension_semantics=("parallel", "arbitrary", "arbitrary"),
            vmem_limit_bytes=_VMEM_LIMIT),
    )(xf, comb, p["w1"], p["b1"], p["w2"], p["b2"],
      ln["g"].reshape(1, D), ln["b"].reshape(1, D))
    return out.reshape(B, S, D)


# --------------------------- parameter construction ---------------------------

def _init_linear(key, fan_in, fan_out, w_dtype=jnp.bfloat16):
    kw, kb = jax.random.split(key)
    bound = 1.0 / math.sqrt(fan_in)
    w = jax.random.uniform(kw, (fan_in, fan_out), jnp.float32, -bound, bound)
    b = jax.random.uniform(kb, (fan_out,), jnp.float32, -bound, bound)
    return w.astype(w_dtype), b                       # bf16 weights, f32 bias


def _init_mha(key, d):
    kq, kk, kv, ko = jax.random.split(key, 4)
    wq, bq = _init_linear(kq, d, d)
    wk, bk = _init_linear(kk, d, d)
    wv, bv = _init_linear(kv, d, d)
    wo, bo = _init_linear(ko, d, d)
    return {"wq": wq, "bq": bq,
            "wkv": jnp.concatenate([wk, wv], axis=1),   # fused K|V projection
            "bkv": jnp.concatenate([bk, bv]),
            "wo": wo, "bo": bo}


def _init_moe(key, d_model, d_ff, num_experts):
    kg, ke = jax.random.split(key)
    gate_w, gate_b = _init_linear(kg, d_model, num_experts, w_dtype=jnp.float32)
    w1, b1, w2, b2 = [], [], [], []
    for k in jax.random.split(ke, num_experts):
        k1, k2 = jax.random.split(k)
        w, b = _init_linear(k1, d_model, d_ff)
        w1.append(w); b1.append(b)
        w, b = _init_linear(k2, d_ff, d_model)
        w2.append(w); b2.append(b)
    return {"gate_w": gate_w, "gate_b": gate_b,
            "w1": jnp.stack(w1), "b1": jnp.stack(b1)[:, None, :],
            "w2": jnp.stack(w2), "b2": jnp.stack(b2)[:, None, :]}


def _init_ln(d):
    return {"g": jnp.ones((d,), jnp.float32), "b": jnp.zeros((d,), jnp.float32)}


def init_transformer(key, cfg):
    keys = jax.random.split(key, 5)
    d = cfg["d_model"]
    enc_layers = []
    for k in jax.random.split(keys[2], cfg["num_layers"]):
        ka, km = jax.random.split(k)
        enc_layers.append({"attn": _init_mha(ka, d),
                           "moe": _init_moe(km, d, cfg["d_ff"], cfg["num_experts"]),
                           "ln1": _init_ln(d), "ln2": _init_ln(d)})
    dec_layers = []
    for k in jax.random.split(keys[3], cfg["num_layers"]):
        ka, kc, km = jax.random.split(k, 3)
        dec_layers.append({"self_attn": _init_mha(ka, d),
                           "cross_attn": _init_mha(kc, d),
                           "moe": _init_moe(km, d, cfg["d_ff"], cfg["num_experts"]),
                           "ln1": _init_ln(d), "ln2": _init_ln(d),
                           "ln3": _init_ln(d)})
    fw, fb = _init_linear(keys[4], d, cfg["tgt_vocab"])
    return {
        "enc_embed": 0.02 * jax.random.normal(keys[0], (cfg["src_vocab"], d), jnp.float32),
        "dec_embed": 0.02 * jax.random.normal(keys[1], (cfg["tgt_vocab"], d), jnp.float32),
        "encoder": enc_layers,
        "decoder": dec_layers,
        "final": {"w": fw, "b": fb},
    }


def rope_cache(slen, head_dim, num_heads):
    inv_freq = 1.0 / (10000.0 ** (jnp.arange(0, head_dim, 2, dtype=jnp.float32)
                                  / head_dim))
    t = jnp.arange(slen, dtype=jnp.float32)
    angles = jnp.einsum("i,j->ij", t, inv_freq)
    angles = jnp.concatenate([angles, angles], axis=-1)      # (S, hd)
    # Tiled across heads once on the host -> merged-head (S, D) caches.
    cos = jnp.tile(jnp.cos(angles), (1, num_heads))
    sin = jnp.tile(jnp.sin(angles), (1, num_heads))
    return cos, sin


# -------------------------------- forward pass --------------------------------

def mha_forward(p, x, cos, sin, cfg, *, ln, xcross=None, causal=False):
    """out = LayerNorm(x + o_proj(attention(...))), add+LN fused into o_proj."""
    B, Sq, D = x.shape
    xf = x.reshape(B * Sq, D)
    q = linear(xf, p["wq"], p["bq"]).reshape(B, Sq, D)
    if xcross is None:
        kv_in, Sk = xf, Sq
    else:
        Sk = xcross.shape[1]
        kv_in = xcross.reshape(B * Sk, D)
    kv = linear(kv_in, p["wkv"], p["bkv"]).reshape(B, Sk, 2 * D)  # fused K|V
    # NOTE: matching the reference, RoPE is applied to K in cross-attention too
    # (shared cache; Sq == Sk in this model).
    ctx = attention(q, kv, cos, sin, causal=causal, num_heads=cfg["num_heads"])
    out = linear(ctx.reshape(B * Sq, D), p["wo"], p["bo"],
                 residual=xf, ln_gamma=ln["g"], ln_beta=ln["b"])
    return out.reshape(B, Sq, D)


def encoder_layer(p, x, cos, sin, cfg):
    x = mha_forward(p["attn"], x, cos, sin, cfg, ln=p["ln1"], causal=False)
    return moe_forward(p["moe"], x, p["ln2"], cfg)


def decoder_layer(p, x, enc, cos, sin, cfg):
    x = mha_forward(p["self_attn"], x, cos, sin, cfg, ln=p["ln1"], causal=True)
    x = mha_forward(p["cross_attn"], x, cos, sin, cfg, ln=p["ln2"], xcross=enc)
    return moe_forward(p["moe"], x, p["ln3"], cfg)


def transformer_forward(params, src, tgt, cos, sin, cfg):
    # TODO(synk): embedding gather stays in plain JAX (jnp.take); no dense hot path.
    enc = jnp.take(params["enc_embed"], src, axis=0).astype(jnp.bfloat16)
    dec = jnp.take(params["dec_embed"], tgt, axis=0).astype(jnp.bfloat16)
    for lp in params["encoder"]:
        enc = encoder_layer(lp, enc, cos, sin, cfg)
    for lp in params["decoder"]:
        dec = decoder_layer(lp, dec, enc, cos, sin, cfg)
    B, S, D = dec.shape
    logits = linear(dec.reshape(B * S, D), params["final"]["w"],
                    params["final"]["b"], out_dtype=jnp.float32)
    return logits.reshape(B, S, cfg["tgt_vocab"])


# ------------------------------------ main -------------------------------------

if __name__ == "__main__":
    cfg = dict(src_vocab=64, tgt_vocab=64, d_model=32, num_heads=4, d_ff=64,
               num_experts=4, top_k=2, num_layers=2, seq=8, batch=2)
    key = jax.random.PRNGKey(0)
    kp, ks, kt = jax.random.split(key, 3)
    params = init_transformer(kp, cfg)
    src = jax.random.randint(ks, (cfg["batch"], cfg["seq"]), 0, cfg["src_vocab"],
                             dtype=jnp.int32)
    tgt = jax.random.randint(kt, (cfg["batch"], cfg["seq"]), 0, cfg["tgt_vocab"],
                             dtype=jnp.int32)
    cos, sin = rope_cache(cfg["seq"], cfg["d_model"] // cfg["num_heads"],
                          cfg["num_heads"])

    fwd = jax.jit(functools.partial(transformer_forward, cfg=cfg))
    out = fwd(params, src, tgt, cos, sin)
    jax.block_until_ready(out)
    assert out.shape == (cfg["batch"], cfg["seq"], cfg["tgt_vocab"])
    assert bool(jnp.all(jnp.isfinite(out)))
    print("KERNEL_OK")
</pallas_src>

<mosaic_0001>
module attributes {stable_mosaic.version = 11 : i64} {
  func.func @_linear_kernel(%arg0: i32, %arg1: i32, %arg2: i32, %arg3: memref<16x32xbf16, #tpu.memory_space<vmem>>, %arg4: memref<32x64xbf16, #tpu.memory_space<vmem>>, %arg5: memref<1x64xf32, #tpu.memory_space<vmem>>, %arg6: memref<16x64xbf16, #tpu.memory_space<vmem>>, %arg7: memref<16x64xf32, #tpu.memory_space<vmem>>) attributes {dimension_semantics = [#tpu.dimension_semantics<parallel>, #tpu.dimension_semantics<parallel>, #tpu.dimension_semantics<arbitrary>], iteration_bounds = array<i64: 1, 1, 1>, scalar_prefetch = 0 : i64, scratch_operands = 1 : i64, tpu.core_type = #tpu.core_type<tc>, window_params = [{transform_indices = @transform_0, window_bounds = array<i64: 16, 32>}, {transform_indices = @transform_1, window_bounds = array<i64: 32, 64>}, {transform_indices = @transform_2, window_bounds = array<i64: 1, 64>}, {transform_indices = @transform_3, window_bounds = array<i64: 16, 64>}]} {
    %c0_i32 = arith.constant 0 : i32
    %0 = arith.cmpi eq, %arg2, %c0_i32 : i32
    %1 = arith.extui %0 : i1 to i32
    %c0_i32_0 = arith.constant 0 : i32
    %2 = arith.cmpi ne, %1, %c0_i32_0 : i32
    scf.if %2 {
      %cst_10 = arith.constant 0.000000e+00 : f32
      %12 = vector.broadcast %cst_10 : f32 to vector<16x64xf32>
      %c0_11 = arith.constant 0 : index
      %c0_12 = arith.constant 0 : index
      %13 = vector.load %arg7[%c0_11, %c0_12] : memref<16x64xf32, #tpu.memory_space<vmem>>, vector<16x64xf32>
      tpu.vector_store %arg7[%c0_11, %c0_12], %12 {strides = array<i32>} : memref<16x64xf32, #tpu.memory_space<vmem>>, vector<16x64xf32>,
    } else {
    }
    %c0 = arith.constant 0 : index
    %c0_1 = arith.constant 0 : index
    %3 = vector.load %arg7[%c0, %c0_1] : memref<16x64xf32, #tpu.memory_space<vmem>>, vector<16x64xf32>
    %c0_2 = arith.constant 0 : index
    %c0_3 = arith.constant 0 : index
    %4 = vector.load %arg3[%c0_2, %c0_3] : memref<16x32xbf16, #tpu.memory_space<vmem>>, vector<16x32xbf16>
    %c0_4 = arith.constant 0 : index
    %c0_5 = arith.constant 0 : index
    %5 = vector.load %arg4[%c0_4, %c0_5] : memref<32x64xbf16, #tpu.memory_space<vmem>>, vector<32x64xbf16>
    %cst = arith.constant dense<0.000000e+00> : vector<16x64xf32>
    %6 = tpu.matmul %4, %5, %cst {dimension_numbers = #tpu.dot_dimension_numbers<[1], [0], [0], [1], [0, 0, 1, 1], [], []>} : vector<16x32xbf16>, vector<32x64xbf16>, vector<16x64xf32> -> vector<16x64xf32>
    %7 = arith.addf %3, %6 : vector<16x64xf32>
    %c0_6 = arith.constant 0 : index
    %c0_7 = arith.constant 0 : index
    %8 = vector.load %arg7[%c0_6, %c0_7] : memref<16x64xf32, #tpu.memory_space<vmem>>, vector<16x64xf32>
    tpu.vector_store %arg7[%c0_6, %c0_7], %7 {strides = array<i32>} : memref<16x64xf32, #tpu.memory_space<vmem>>, vector<16x64xf32>,
    %c0_i32_8 = arith.constant 0 : i32
    %9 = arith.cmpi eq, %arg2, %c0_i32_8 : i32
    %10 = arith.extui %9 : i1 to i32
    %c0_i32_9 = arith.constant 0 : i32
    %11 = arith.cmpi ne, %10, %c0_i32_9 : i32
    scf.if %11 {
      %c0_10 = arith.constant 0 : index
      %c0_11 = arith.constant 0 : index
      %12 = vector.load %arg7[%c0_10, %c0_11] : memref<16x64xf32, #tpu.memory_space<vmem>>, vector<16x64xf32>
      %c0_12 = arith.constant 0 : index
      %c0_13 = arith.constant 0 : index
      %13 = vector.load %arg5[%c0_12, %c0_13] : memref<1x64xf32, #tpu.memory_space<vmem>>, vector<1x64xf32>
      %14 = vector.broadcast %13 : vector<1x64xf32> to vector<16x64xf32>
      %15 = arith.addf %12, %14 : vector<16x64xf32>
      %16 = arith.truncf %15 : vector<16x64xf32> to vector<16x64xbf16>
      %c0_14 = arith.constant 0 : index
      %c0_15 = arith.constant 0 : index
      %17 = vector.load %arg6[%c0_14, %c0_15] : memref<16x64xbf16, #tpu.memory_space<vmem>>, vector<16x64xbf16>
      tpu.vector_store %arg6[%c0_14, %c0_15], %16 {strides = array<i32>} : memref<16x64xbf16, #tpu.memory_space<vmem>>, vector<16x64xbf16>,
    } else {
    }
    return
  }
  func.func @transform_0(%arg0: i32, %arg1: i32, %arg2: i32) -> (i32, i32) {
    %c0_i32 = arith.constant 0 : i32
    return %arg0, %arg2 : i32, i32
  }
  func.func @transform_1(%arg0: i32, %arg1: i32, %arg2: i32) -> (i32, i32) {
    %c0_i32 = arith.constant 0 : i32
    return %arg2, %arg1 : i32, i32
  }
  func.func @transform_2(%arg0: i32, %arg1: i32, %arg2: i32) -> (i32, i32) {
    %c0_i32 = arith.constant 0 : i32
    %c0_i32_0 = arith.constant 0 : i32
    return %c0_i32, %arg1 : i32, i32
  }
  func.func @transform_3(%arg0: i32, %arg1: i32, %arg2: i32) -> (i32, i32) {
    %c0_i32 = arith.constant 0 : i32
    return %arg0, %arg1 : i32, i32
  }
}

module attributes {stable_mosaic.version = 11 : i64} {
  func.func @_linear_kernel(%arg0: i32, %arg1: i32, %arg2: i32, %arg3: memref<16x32xbf16, #tpu.memory_space<vmem>>, %arg4: memref<32x32xbf16, #tpu.memory_space<vmem>>, %arg5: memref<1x32xf32, #tpu.memory_space<vmem>>, %arg6: memref<16x32xbf16, #tpu.memory_space<vmem>>, %arg7: memref<16x32xf32, #tpu.memory_space<vmem>>) attributes {dimension_semantics = [#tpu.dimension_semantics<parallel>, #tpu.dimension_semantics<parallel>, #tpu.dimension_semantics<arbitrary>], iteration_bounds = array<i64: 1, 1, 1>, scalar_prefetch = 0 : i64, scratch_operands = 1 : i64, tpu.core_type = #tpu.core_type<tc>, window_params = [{transform_indices = @transform_0, window_bounds = array<i64: 16, 32>}, {transform_indices = @transform_1, window_bounds = array<i64: 32, 32>}, {transform_indices = @transform_2, window_bounds = array<i64: 1, 32>}, {transform_indices = @transform_3, window_bounds = array<i64: 16, 32>}]} {
    %c0_i32 = arith.constant 0 : i32
    %0 = arith.cmpi eq, %arg2, %c0_i32 : i32
    %1 = arith.extui %0 : i1 to i32
    %c0_i32_0 = arith.constant 0 : i32
    %2 = arith.cmpi ne, %1, %c0_i32_0 : i32
    scf.if %2 {
      %cst_10 = arith.constant 0.000000e+00 : f32
      %12 = vector.broadcast %cst_10 : f32 to vector<16x32xf32>
      %c0_11 = arith.constant 0 : index
      %c0_12 = arith.constant 0 : index
      %13 = vector.load %arg7[%c0_11, %c0_12] : memref<16x32xf32, #tpu.memory_space<vmem>>, vector<16x32xf32>
      tpu.vector_store %arg7[%c0_11, %c0_12], %12 {strides = array<i32>} : memref<16x32xf32, #tpu.memory_space<vmem>>, vector<16x32xf32>,
    } else {
    }
    %c0 = arith.constant 0 : index
    %c0_1 = arith.constant 0 : index
    %3 = vector.load %arg7[%c0, %c0_1] : memref<16x32xf32, #tpu.memory_space<vmem>>, vector<16x32xf32>
    %c0_2 = arith.constant 0 : index
    %c0_3 = arith.constant 0 : index
    %4 = vector.load %arg3[%c0_2, %c0_3] : memref<16x32xbf16, #tpu.memory_space<vmem>>, vector<16x32xbf16>
    %c0_4 = arith.constant 0 : index
    %c0_5 = arith.constant 0 : index
    %5 = vector.load %arg4[%c0_4, %c0_5] : memref<32x32xbf16, #tpu.memory_space<vmem>>, vector<32x32xbf16>
    %cst = arith.constant dense<0.000000e+00> : vector<16x32xf32>
    %6 = tpu.matmul %4, %5, %cst {dimension_numbers = #tpu.dot_dimension_numbers<[1], [0], [0], [1], [0, 0, 1, 1], [], []>} : vector<16x32xbf16>, vector<32x32xbf16>, vector<16x32xf32> -> vector<16x32xf32>
    %7 = arith.addf %3, %6 : vector<16x32xf32>
    %c0_6 = arith.constant 0 : index
    %c0_7 = arith.constant 0 : index
    %8 = vector.load %arg7[%c0_6, %c0_7] : memref<16x32xf32, #tpu.memory_space<vmem>>, vector<16x32xf32>
    tpu.vector_store %arg7[%c0_6, %c0_7], %7 {strides = array<i32>} : memref<16x32xf32, #tpu.memory_space<vmem>>, vector<16x32xf32>,
    %c0_i32_8 = arith.constant 0 : i32
    %9 = arith.cmpi eq, %arg2, %c0_i32_8 : i32
    %10 = arith.extui %9 : i1 to i32
    %c0_i32_9 = arith.constant 0 : i32
    %11 = arith.cmpi ne, %10, %c0_i32_9 : i32
    scf.if %11 {
      %c0_10 = arith.constant 0 : index
      %c0_11 = arith.constant 0 : index
      %12 = vector.load %arg7[%c0_10, %c0_11] : memref<16x32xf32, #tpu.memory_space<vmem>>, vector<16x32xf32>
      %c0_12 = arith.constant 0 : index
      %c0_13 = arith.constant 0 : index
      %13 = vector.load %arg5[%c0_12, %c0_13] : memref<1x32xf32, #tpu.memory_space<vmem>>, vector<1x32xf32>
      %14 = vector.broadcast %13 : vector<1x32xf32> to vector<16x32xf32>
      %15 = arith.addf %12, %14 : vector<16x32xf32>
      %16 = arith.truncf %15 : vector<16x32xf32> to vector<16x32xbf16>
      %c0_14 = arith.constant 0 : index
      %c0_15 = arith.constant 0 : index
      %17 = vector.load %arg6[%c0_14, %c0_15] : memref<16x32xbf16, #tpu.memory_space<vmem>>, vector<16x32xbf16>
      tpu.vector_store %arg6[%c0_14, %c0_15], %16 {strides = array<i32>} : memref<16x32xbf16, #tpu.memory_space<vmem>>, vector<16x32xbf16>,
    } else {
    }
    return
  }
  func.func @transform_0(%arg0: i32, %arg1: i32, %arg2: i32) -> (i32, i32) {
    %c0_i32 = arith.constant 0 : i32
    return %arg0, %arg2 : i32, i32
  }
  func.func @transform_1(%arg0: i32, %arg1: i32, %arg2: i32) -> (i32, i32) {
    %c0_i32 = arith.constant 0 : i32
    return %arg2, %arg1 : i32, i32
  }
  func.func @transform_2(%arg0: i32, %arg1: i32, %arg2: i32) -> (i32, i32) {
    %c0_i32 = arith.constant 0 : i32
    %c0_i32_0 = arith.constant 0 : i32
    return %c0_i32, %arg1 : i32, i32
  }
  func.func @transform_3(%arg0: i32, %arg1: i32, %arg2: i32) -> (i32, i32) {
    %c0_i32 = arith.constant 0 : i32
    return %arg0, %arg1 : i32, i32
  }
}

module attributes {stable_mosaic.version = 11 : i64} {
  func.func @_attn_kernel(%arg0: i32, %arg1: i32, %arg2: memref<1x8x32xbf16, #tpu.memory_space<vmem>>, %arg3: memref<1x8x64xbf16, #tpu.memory_space<vmem>>, %arg4: memref<8x32xf32, #tpu.memory_space<vmem>>, %arg5: memref<8x32xf32, #tpu.memory_space<vmem>>, %arg6: memref<8x32xf32, #tpu.memory_space<vmem>>, %arg7: memref<8x32xf32, #tpu.memory_space<vmem>>, %arg8: memref<1x8x32xbf16, #tpu.memory_space<vmem>>) attributes {dimension_semantics = [#tpu.dimension_semantics<parallel>, #tpu.dimension_semantics<parallel>], iteration_bounds = array<i64: 2, 1>, scalar_prefetch = 0 : i64, scratch_operands = 0 : i64, tpu.core_type = #tpu.core_type<tc>, window_params = [{transform_indices = @transform_0, window_bounds = array<i64: 1, 8, 32>}, {transform_indices = @transform_1, window_bounds = array<i64: 1, 8, 64>}, {transform_indices = @transform_2, window_bounds = array<i64: 8, 32>}, {transform_indices = @transform_3, window_bounds = array<i64: 8, 32>}, {pipeline_mode = #tpu.pipeline_mode<synchronous>, transform_indices = @transform_4, window_bounds = array<i64: 8, 32>}, {pipeline_mode = #tpu.pipeline_mode<synchronous>, transform_indices = @transform_5, window_bounds = array<i64: 8, 32>}, {transform_indices = @transform_6, window_bounds = array<i64: 1, 8, 32>}]} {
    %c0 = arith.constant 0 : index
    %c0_0 = arith.constant 0 : index
    %c0_1 = arith.constant 0 : index
    %0 = vector.load %arg3[%c0, %c0_0, %c0_1] : memref<1x8x64xbf16, #tpu.memory_space<vmem>>, vector<1x8x64xbf16>
    %1 = vector.shape_cast %0 : vector<1x8x64xbf16> to vector<8x64xbf16>
    %c0_2 = arith.constant 0 : index
    %c0_3 = arith.constant 0 : index
    %c0_4 = arith.constant 0 : index
    %2 = vector.load %arg2[%c0_2, %c0_3, %c0_4] : memref<1x8x32xbf16, #tpu.memory_space<vmem>>, vector<1x8x32xbf16>
    %3 = vector.shape_cast %2 : vector<1x8x32xbf16> to vector<8x32xbf16>
    %4 = arith.extf %3 : vector<8x32xbf16> to vector<8x32xf32>
    %c0_5 = arith.constant 0 : index
    %c0_6 = arith.constant 0 : index
    %5 = vector.load %arg4[%c0_5, %c0_6] : memref<8x32xf32, #tpu.memory_space<vmem>>, vector<8x32xf32>
    %c0_7 = arith.constant 0 : index
    %c0_8 = arith.constant 0 : index
    %6 = vector.load %arg5[%c0_7, %c0_8] : memref<8x32xf32, #tpu.memory_space<vmem>>, vector<8x32xf32>
    %7 = vector.extract_strided_slice %4 {offsets = [0, 4], sizes = [8, 4], strides = [1, 1]} : vector<8x32xf32> to vector<8x4xf32>
    %cst = arith.constant 0.000000e+00 : f32
    %8 = vector.broadcast %cst : f32 to vector<8x4xf32>
    %9 = arith.subf %8, %7 : vector<8x4xf32>
    %10 = vector.extract_strided_slice %4 {offsets = [0, 0], sizes = [8, 4], strides = [1, 1]} : vector<8x32xf32> to vector<8x4xf32>
    %11 = vector.extract_strided_slice %4 {offsets = [0, 12], sizes = [8, 4], strides = [1, 1]} : vector<8x32xf32> to vector<8x4xf32>
    %cst_9 = arith.constant 0.000000e+00 : f32
    %12 = vector.broadcast %cst_9 : f32 to vector<8x4xf32>
    %13 = arith.subf %12, %11 : vector<8x4xf32>
    %14 = vector.extract_strided_slice %4 {offsets = [0, 8], sizes = [8, 4], strides = [1, 1]} : vector<8x32xf32> to vector<8x4xf32>
    %15 = vector.extract_strided_slice %4 {offsets = [0, 20], sizes = [8, 4], strides = [1, 1]} : vector<8x32xf32> to vector<8x4xf32>
    %cst_10 = arith.constant 0.000000e+00 : f32
    %16 = vector.broadcast %cst_10 : f32 to vector<8x4xf32>
    %17 = arith.subf %16, %15 : vector<8x4xf32>
    %18 = vector.extract_strided_slice %4 {offsets = [0, 16], sizes = [8, 4], strides = [1, 1]} : vector<8x32xf32> to vector<8x4xf32>
    %19 = vector.extract_strided_slice %4 {offsets = [0, 28], sizes = [8, 4], strides = [1, 1]} : vector<8x32xf32> to vector<8x4xf32>
    %cst_11 = arith.constant 0.000000e+00 : f32
    %20 = vector.broadcast %cst_11 : f32 to vector<8x4xf32>
    %21 = arith.subf %20, %19 : vector<8x4xf32>
    %22 = vector.extract_strided_slice %4 {offsets = [0, 24], sizes = [8, 4], strides = [1, 1]} : vector<8x32xf32> to vector<8x4xf32>
    %23 = arith.mulf %4, %5 : vector<8x32xf32>
    %24 = tpu.concatenate %9, %10, %13, %14, %17, %18, %21, %22 in 1 : vector<8x4xf32>, vector<8x4xf32>, vector<8x4xf32>, vector<8x4xf32>, vector<8x4xf32>, vector<8x4xf32>, vector<8x4xf32>, vector<8x4xf32> -> vector<8x32xf32>
    %25 = arith.mulf %24, %6 : vector<8x32xf32>
    %26 = arith.addf %23, %25 : vector<8x32xf32>
    %27 = vector.extract_strided_slice %1 {offsets = [0, 0], sizes = [8, 32], strides = [1, 1]} : vector<8x64xbf16> to vector<8x32xbf16>
    %28 = arith.extf %27 : vector<8x32xbf16> to vector<8x32xf32>
    %c0_12 = arith.constant 0 : index
    %c0_13 = arith.constant 0 : index
    %29 = vector.load %arg6[%c0_12, %c0_13] : memref<8x32xf32, #tpu.memory_space<vmem>>, vector<8x32xf32>
    %c0_14 = arith.constant 0 : index
    %c0_15 = arith.constant 0 : index
    %30 = vector.load %arg7[%c0_14, %c0_15] : memref<8x32xf32, #tpu.memory_space<vmem>>, vector<8x32xf32>
    %31 = vector.extract_strided_slice %28 {offsets = [0, 4], sizes = [8, 4], strides = [1, 1]} : vector<8x32xf32> to vector<8x4xf32>
    %cst_16 = arith.constant 0.000000e+00 : f32
    %32 = vector.broadcast %cst_16 : f32 to vector<8x4xf32>
    %33 = arith.subf %32, %31 : vector<8x4xf32>
    %34 = vector.extract_strided_slice %28 {offsets = [0, 0], sizes = [8, 4], strides = [1, 1]} : vector<8x32xf32> to vector<8x4xf32>
    %35 = vector.extract_strided_slice %28 {offsets = [0, 12], sizes = [8, 4], strides = [1, 1]} : vector<8x32xf32> to vector<8x4xf32>
    %cst_17 = arith.constant 0.000000e+00 : f32
    %36 = vector.broadcast %cst_17 : f32 to vector<8x4xf32>
    %37 = arith.subf %36, %35 : vector<8x4xf32>
    %38 = vector.extract_strided_slice %28 {offsets = [0, 8], sizes = [8, 4], strides = [1, 1]} : vector<8x32xf32> to vector<8x4xf32>
    %39 = vector.extract_strided_slice %28 {offsets = [0, 20], sizes = [8, 4], strides = [1, 1]} : vector<8x32xf32> to vector<8x4xf32>
    %cst_18 = arith.constant 0.000000e+00 : f32
    %40 = vector.broadcast %cst_18 : f32 to vector<8x4xf32>
    %41 = arith.subf %40, %39 : vector<8x4xf32>
    %42 = vector.extract_strided_slice %28 {offsets = [0, 16], sizes = [8, 4], strides = [1, 1]} : vector<8x32xf32> to vector<8x4xf32>
    %43 = vector.extract_strided_slice %28 {offsets = [0, 28], sizes = [8, 4], strides = [1, 1]} : vector<8x32xf32> to vector<8x4xf32>
    %cst_19 = arith.constant 0.000000e+00 : f32
    %44 = vector.broadcast %cst_19 : f32 to vector<8x4xf32>
    %45 = arith.subf %44, %43 : vector<8x4xf32>
    %46 = vector.extract_strided_slice %28 {offsets = [0, 24], sizes = [8, 4], strides = [1, 1]} : vector<8x32xf32> to vector<8x4xf32>
    %47 = arith.mulf %28, %29 : vector<8x32xf32>
    %48 = tpu.concatenate %33, %34, %37, %38, %41, %42, %45, %46 in 1 : vector<8x4xf32>, vector<8x4xf32>, vector<8x4xf32>, vector<8x4xf32>, vector<8x4xf32>, vector<8x4xf32>, vector<8x4xf32>, vector<8x4xf32> -> vector<8x32xf32>
    %49 = arith.mulf %48, %30 : vector<8x32xf32>
    %50 = arith.addf %47, %49 : vector<8x32xf32>
    %51 = arith.truncf %26 : vector<8x32xf32> to vector<8x32xbf16>
    %52 = arith.truncf %50 : vector<8x32xf32> to vector<8x32xbf16>
    %53 = vector.extract_strided_slice %1 {offsets = [0, 32], sizes = [8, 32], strides = [1, 1]} : vector<8x64xbf16> to vector<8x32xbf16>
    %54 = vector.extract_strided_slice %51 {offsets = [0, 0], sizes = [8, 8], strides = [1, 1]} : vector<8x32xbf16> to vector<8x8xbf16>
    %55 = vector.extract_strided_slice %52 {offsets = [0, 0], sizes = [8, 8], strides = [1, 1]} : vector<8x32xbf16> to vector<8x8xbf16>
    %cst_20 = arith.constant dense<0.000000e+00> : vector<8x8xf32>
    %56 = tpu.matmul %54, %55, %cst_20 {dimension_numbers = #tpu.dot_dimension_numbers<[1], [1], [0], [0], [0, 0, 1, 0], [], []>} : vector<8x8xbf16>, vector<8x8xbf16>, vector<8x8xf32> -> vector<8x8xf32>
    %cst_21 = arith.constant 0.353553385 : f32
    %57 = vector.broadcast %cst_21 : f32 to vector<8x8xf32>
    %58 = arith.mulf %56, %57 : vector<8x8xf32>
    %cst_22 = arith.constant dense<0xFF800000> : vector<8xf32>
    %59 = vector.multi_reduction <maximumf>, %58, %cst_22 [1] : vector<8x8xf32> to vector<8xf32>
    %60 = vector.shape_cast %59 : vector<8xf32> to vector<8x1xf32>
    %61 = vector.broadcast %60 : vector<8x1xf32> to vector<8x8xf32>
    %62 = arith.subf %58, %61 : vector<8x8xf32>
    %63 = math.exp %62 : vector<8x8xf32>
    %cst_23 = arith.constant dense<0.000000e+00> : vector<8xf32>
    %64 = vector.multi_reduction <add>, %63, %cst_23 [1] : vector<8x8xf32> to vector<8xf32>
    %65 = vector.shape_cast %64 : vector<8xf32> to vector<8x1xf32>
    %66 = tpu.reciprocal %65 {approx = true} : vector<8x1xf32> -> vector<8x1xf32>
    %67 = vector.broadcast %66 : vector<8x1xf32> to vector<8x8xf32>
    %68 = arith.mulf %63, %67 : vector<8x8xf32>
    %69 = arith.truncf %68 : vector<8x8xf32> to vector<8x8xbf16>
    %70 = vector.extract_strided_slice %53 {offsets = [0, 0], sizes = [8, 8], strides = [1, 1]} : vector<8x32xbf16> to vector<8x8xbf16>
    %cst_24 = arith.constant dense<0.000000e+00> : vector<8x8xf32>
    %71 = tpu.matmul %69, %70, %cst_24 {dimension_numbers = #tpu.dot_dimension_numbers<[1], [0], [0], [1], [0, 0, 1, 1], [], []>} : vector<8x8xbf16>, vector<8x8xbf16>, vector<8x8xf32> -> vector<8x8xf32>
    %72 = arith.truncf %71 : vector<8x8xf32> to vector<8x8xbf16>
    %c0_25 = arith.constant 0 : index
    %c0_26 = arith.constant 0 : index
    %c0_27 = arith.constant 0 : index
    %73 = vector.load %arg8[%c0_25, %c0_26, %c0_27] : memref<1x8x32xbf16, #tpu.memory_space<vmem>>, vector<1x8x8xbf16>
    %74 = vector.shape_cast %73 : vector<1x8x8xbf16> to vector<8x8xbf16>
    %75 = vector.shape_cast %72 : vector<8x8xbf16> to vector<1x8x8xbf16>
    tpu.vector_store %arg8[%c0_25, %c0_26, %c0_27], %75 {strides = array<i32>} : memref<1x8x32xbf16, #tpu.memory_space<vmem>>, vector<1x8x8xbf16>,
    %76 = vector.extract_strided_slice %51 {offsets = [0, 8], sizes = [8, 8], strides = [1, 1]} : vector<8x32xbf16> to vector<8x8xbf16>
    %77 = vector.extract_strided_slice %52 {offsets = [0, 8], sizes = [8, 8], strides = [1, 1]} : vector<8x32xbf16> to vector<8x8xbf16>
    %cst_28 = arith.constant dense<0.000000e+00> : vector<8x8xf32>
    %78 = tpu.matmul %76, %77, %cst_28 {dimension_numbers = #tpu.dot_dimension_numbers<[1], [1], [0], [0], [0, 0, 1, 0], [], []>} : vector<8x8xbf16>, vector<8x8xbf16>, vector<8x8xf32> -> vector<8x8xf32>
    %cst_29 = arith.constant 0.353553385 : f32
    %79 = vector.broadcast %cst_29 : f32 to vector<8x8xf32>
    %80 = arith.mulf %78, %79 : vector<8x8xf32>
    %cst_30 = arith.constant dense<0xFF800000> : vector<8xf32>
    %81 = vector.multi_reduction <maximumf>, %80, %cst_30 [1] : vector<8x8xf32> to vector<8xf32>
    %82 = vector.shape_cast %81 : vector<8xf32> to vector<8x1xf32>
    %83 = vector.broadcast %82 : vector<8x1xf32> to vector<8x8xf32>
    %84 = arith.subf %80, %83 : vector<8x8xf32>
    %85 = math.exp %84 : vector<8x8xf32>
    %cst_31 = arith.constant dense<0.000000e+00> : vector<8xf32>
    %86 = vector.multi_reduction <add>, %85, %cst_31 [1] : vector<8x8xf32> to vector<8xf32>
    %87 = vector.shape_cast %86 : vector<8xf32> to vector<8x1xf32>
    %88 = tpu.reciprocal %87 {approx = true} : vector<8x1xf32> -> vector<8x1xf32>
    %89 = vector.broadcast %88 : vector<8x1xf32> to vector<8x8xf32>
    %90 = arith.mulf %85, %89 : vector<8x8xf32>
    %91 = arith.truncf %90 : vector<8x8xf32> to vector<8x8xbf16>
    %92 = vector.extract_strided_slice %53 {offsets = [0, 8], sizes = [8, 8], strides = [1, 1]} : vector<8x32xbf16> to vector<8x8xbf16>
    %cst_32 = arith.constant dense<0.000000e+00> : vector<8x8xf32>
    %93 = tpu.matmul %91, %92, %cst_32 {dimension_numbers = #tpu.dot_dimension_numbers<[1], [0], [0], [1], [0, 0, 1, 1], [], []>} : vector<8x8xbf16>, vector<8x8xbf16>, vector<8x8xf32> -> vector<8x8xf32>
    %94 = arith.truncf %93 : vector<8x8xf32> to vector<8x8xbf16>
    %c0_33 = arith.constant 0 : index
    %c0_34 = arith.constant 0 : index
    %c8 = arith.constant 8 : index
    %95 = vector.load %arg8[%c0_33, %c0_34, %c8] : memref<1x8x32xbf16, #tpu.memory_space<vmem>>, vector<1x8x8xbf16>
    %96 = vector.shape_cast %95 : vector<1x8x8xbf16> to vector<8x8xbf16>
    %97 = vector.shape_cast %94 : vector<8x8xbf16> to vector<1x8x8xbf16>
    tpu.vector_store %arg8[%c0_33, %c0_34, %c8], %97 {strides = array<i32>} : memref<1x8x32xbf16, #tpu.memory_space<vmem>>, vector<1x8x8xbf16>,
    %98 = vector.extract_strided_slice %51 {offsets = [0, 16], sizes = [8, 8], strides = [1, 1]} : vector<8x32xbf16> to vector<8x8xbf16>
    %99 = vector.extract_strided_slice %52 {offsets = [0, 16], sizes = [8, 8], strides = [1, 1]} : vector<8x32xbf16> to vector<8x8xbf16>
    %cst_35 = arith.constant dense<0.000000e+00> : vector<8x8xf32>
    %100 = tpu.matmul %98, %99, %cst_35 {dimension_numbers = #tpu.dot_dimension_numbers<[1], [1], [0], [0], [0, 0, 1, 0], [], []>} : vector<8x8xbf16>, vector<8x8xbf16>, vector<8x8xf32> -> vector<8x8xf32>
    %cst_36 = arith.constant 0.353553385 : f32
    %101 = vector.broadcast %cst_36 : f32 to vector<8x8xf32>
    %102 = arith.mulf %100, %101 : vector<8x8xf32>
    %cst_37 = arith.constant dense<0xFF800000> : vector<8xf32>
    %103 = vector.multi_reduction <maximumf>, %102, %cst_37 [1] : vector<8x8xf32> to vector<8xf32>
    %104 = vector.shape_cast %103 : vector<8xf32> to vector<8x1xf32>
    %105 = vector.broadcast %104 : vector<8x1xf32> to vector<8x8xf32>
    %106 = arith.subf %102, %105 : vector<8x8xf32>
    %107 = math.exp %106 : vector<8x8xf32>
    %cst_38 = arith.constant dense<0.000000e+00> : vector<8xf32>
    %108 = vector.multi_reduction <add>, %107, %cst_38 [1] : vector<8x8xf32> to vector<8xf32>
    %109 = vector.shape_cast %108 : vector<8xf32> to vector<8x1xf32>
    %110 = tpu.reciprocal %109 {approx = true} : vector<8x1xf32> -> vector<8x1xf32>
    %111 = vector.broadcast %110 : vector<8x1xf32> to vector<8x8xf32>
    %112 = arith.mulf %107, %111 : vector<8x8xf32>
    %113 = arith.truncf %112 : vector<8x8xf32> to vector<8x8xbf16>
    %114 = vector.extract_strided_slice %53 {offsets = [0, 16], sizes = [8, 8], strides = [1, 1]} : vector<8x32xbf16> to vector<8x8xbf16>
    %cst_39 = arith.constant dense<0.000000e+00> : vector<8x8xf32>
    %115 = tpu.matmul %113, %114, %cst_39 {dimension_numbers = #tpu.dot_dimension_numbers<[1], [0], [0], [1], [0, 0, 1, 1], [], []>} : vector<8x8xbf16>, vector<8x8xbf16>, vector<8x8xf32> -> vector<8x8xf32>
    %116 = arith.truncf %115 : vector<8x8xf32> to vector<8x8xbf16>
    %c0_40 = arith.constant 0 : index
    %c0_41 = arith.constant 0 : index
    %c16 = arith.constant 16 : index
    %117 = vector.load %arg8[%c0_40, %c0_41, %c16] : memref<1x8x32xbf16, #tpu.memory_space<vmem>>, vector<1x8x8xbf16>
    %118 = vector.shape_cast %117 : vector<1x8x8xbf16> to vector<8x8xbf16>
    %119 = vector.shape_cast %116 : vector<8x8xbf16> to vector<1x8x8xbf16>
    tpu.vector_store %arg8[%c0_40, %c0_41, %c16], %119 {strides = array<i32>} : memref<1x8x32xbf16, #tpu.memory_space<vmem>>, vector<1x8x8xbf16>,
    %120 = vector.extract_strided_slice %51 {offsets = [0, 24], sizes = [8, 8], strides = [1, 1]} : vector<8x32xbf16> to vector<8x8xbf16>
    %121 = vector.extract_strided_slice %52 {offsets = [0, 24], sizes = [8, 8], strides = [1, 1]} : vector<8x32xbf16> to vector<8x8xbf16>
    %cst_42 = arith.constant dense<0.000000e+00> : vector<8x8xf32>
    %122 = tpu.matmul %120, %121, %cst_42 {dimension_numbers = #tpu.dot_dimension_numbers<[1], [1], [0], [0], [0, 0, 1, 0], [], []>} : vector<8x8xbf16>, vector<8x8xbf16>, vector<8x8xf32> -> vector<8x8xf32>
    %cst_43 = arith.constant 0.353553385 : f32
    %123 = vector.broadcast %cst_43 : f32 to vector<8x8xf32>
    %124 = arith.mulf %122, %123 : vector<8x8xf32>
    %cst_44 = arith.constant dense<0xFF800000> : vector<8xf32>
    %125 = vector.multi_reduction <maximumf>, %124, %cst_44 [1] : vector<8x8xf32> to vector<8xf32>
    %126 = vector.shape_cast %125 : vector<8xf32> to vector<8x1xf32>
    %127 = vector.broadcast %126 : vector<8x1xf32> to vector<8x8xf32>
    %128 = arith.subf %124, %127 : vector<8x8xf32>
    %129 = math.exp %128 : vector<8x8xf32>
    %cst_45 = arith.constant dense<0.000000e+00> : vector<8xf32>
    %130 = vector.multi_reduction <add>, %129, %cst_45 [1] : vector<8x8xf32> to vector<8xf32>
    %131 = vector.shape_cast %130 : vector<8xf32> to vector<8x1xf32>
    %132 = tpu.reciprocal %131 {approx = true} : vector<8x1xf32> -> vector<8x1xf32>
    %133 = vector.broadcast %132 : vector<8x1xf32> to vector<8x8xf32>
    %134 = arith.mulf %129, %133 : vector<8x8xf32>
    %135 = arith.truncf %134 : vector<8x8xf32> to vector<8x8xbf16>
    %136 = vector.extract_strided_slice %53 {offsets = [0, 24], sizes = [8, 8], strides = [1, 1]} : vector<8x32xbf16> to vector<8x8xbf16>
    %cst_46 = arith.constant dense<0.000000e+00> : vector<8x8xf32>
    %137 = tpu.matmul %135, %136, %cst_46 {dimension_numbers = #tpu.dot_dimension_numbers<[1], [0], [0], [1], [0, 0, 1, 1], [], []>} : vector<8x8xbf16>, vector<8x8xbf16>, vector<8x8xf32> -> vector<8x8xf32>
    %138 = arith.truncf %137 : vector<8x8xf32> to vector<8x8xbf16>
    %c0_47 = arith.constant 0 : index
    %c0_48 = arith.constant 0 : index
    %c24 = arith.constant 24 : index
    %139 = vector.load %arg8[%c0_47, %c0_48, %c24] : memref<1x8x32xbf16, #tpu.memory_space<vmem>>, vector<1x8x8xbf16>
    %140 = vector.shape_cast %139 : vector<1x8x8xbf16> to vector<8x8xbf16>
    %141 = vector.shape_cast %138 : vector<8x8xbf16> to vector<1x8x8xbf16>
    tpu.vector_store %arg8[%c0_47, %c0_48, %c24], %141 {strides = array<i32>} : memref<1x8x32xbf16, #tpu.memory_space<vmem>>, vector<1x8x8xbf16>,
    return
  }
  func.func @transform_0(%arg0: i32, %arg1: i32) -> (i32, i32, i32) {
    %c0_i32 = arith.constant 0 : i32
    %c0_i32_0 = arith.constant 0 : i32
    return %arg0, %arg1, %c0_i32 : i32, i32, i32
  }
  func.func @transform_1(%arg0: i32, %arg1: i32) -> (i32, i32, i32) {
    %c0_i32 = arith.constant 0 : i32
    %c0_i32_0 = arith.constant 0 : i32
    %c0_i32_1 = arith.constant 0 : i32
    return %arg0, %c0_i32, %c0_i32_0 : i32, i32, i32
  }
  func.func @transform_2(%arg0: i32, %arg1: i32) -> (i32, i32) {
    %c0_i32 = arith.constant 0 : i32
    %c0_i32_0 = arith.constant 0 : i32
    return %arg1, %c0_i32 : i32, i32
  }
  func.func @transform_3(%arg0: i32, %arg1: i32) -> (i32, i32) {
    %c0_i32 = arith.constant 0 : i32
    %c0_i32_0 = arith.constant 0 : i32
    return %arg1, %c0_i32 : i32, i32
  }
  func.func @transform_4(%arg0: i32, %arg1: i32) -> (i32, i32) {
    %c0_i32 = arith.constant 0 : i32
    %c0_i32_0 = arith.constant 0 : i32
    %c0_i32_1 = arith.constant 0 : i32
    return %c0_i32, %c0_i32_0 : i32, i32
  }
  func.func @transform_5(%arg0: i32, %arg1: i32) -> (i32, i32) {
    %c0_i32 = arith.constant 0 : i32
    %c0_i32_0 = arith.constant 0 : i32
    %c0_i32_1 = arith.constant 0 : i32
    return %c0_i32, %c0_i32_0 : i32, i32
  }
  func.func @transform_6(%arg0: i32, %arg1: i32) -> (i32, i32, i32) {
    %c0_i32 = arith.constant 0 : i32
    %c0_i32_0 = arith.constant 0 : i32
    return %arg0, %arg1, %c0_i32 : i32, i32, i32
  }
}

module attributes {stable_mosaic.version = 11 : i64} {
  func.func @_linear_ln_kernel(%arg0: i32, %arg1: i32, %arg2: i32, %arg3: memref<16x32xbf16, #tpu.memory_space<vmem>>, %arg4: memref<32x32xbf16, #tpu.memory_space<vmem>>, %arg5: memref<1x32xf32, #tpu.memory_space<vmem>>, %arg6: memref<16x32xbf16, #tpu.memory_space<vmem>>, %arg7: memref<1x32xf32, #tpu.memory_space<vmem>>, %arg8: memref<1x32xf32, #tpu.memory_space<vmem>>, %arg9: memref<16x32xbf16, #tpu.memory_space<vmem>>, %arg10: memref<16x32xf32, #tpu.memory_space<vmem>>) attributes {dimension_semantics = [#tpu.dimension_semantics<parallel>, #tpu.dimension_semantics<parallel>, #tpu.dimension_semantics<arbitrary>], iteration_bounds = array<i64: 1, 1, 1>, scalar_prefetch = 0 : i64, scratch_operands = 1 : i64, tpu.core_type = #tpu.core_type<tc>, window_params = [{transform_indices = @transform_0, window_bounds = array<i64: 16, 32>}, {transform_indices = @transform_1, window_bounds = array<i64: 32, 32>}, {transform_indices = @transform_2, window_bounds = array<i64: 1, 32>}, {transform_indices = @transform_3, window_bounds = array<i64: 16, 32>}, {pipeline_mode = #tpu.pipeline_mode<synchronous>, transform_indices = @transform_4, window_bounds = array<i64: 1, 32>}, {pipeline_mode = #tpu.pipeline_mode<synchronous>, transform_indices = @transform_5, window_bounds = array<i64: 1, 32>}, {transform_indices = @transform_6, window_bounds = array<i64: 16, 32>}]} {
    %c0_i32 = arith.constant 0 : i32
    %0 = arith.cmpi eq, %arg2, %c0_i32 : i32
    %1 = arith.extui %0 : i1 to i32
    %c0_i32_0 = arith.constant 0 : i32
    %2 = arith.cmpi ne, %1, %c0_i32_0 : i32
    scf.if %2 {
      %cst_10 = arith.constant 0.000000e+00 : f32
      %12 = vector.broadcast %cst_10 : f32 to vector<16x32xf32>
      %c0_11 = arith.constant 0 : index
      %c0_12 = arith.constant 0 : index
      %13 = vector.load %arg10[%c0_11, %c0_12] : memref<16x32xf32, #tpu.memory_space<vmem>>, vector<16x32xf32>
      tpu.vector_store %arg10[%c0_11, %c0_12], %12 {strides = array<i32>} : memref<16x32xf32, #tpu.memory_space<vmem>>, vector<16x32xf32>,
    } else {
    }
    %c0 = arith.constant 0 : index
    %c0_1 = arith.constant 0 : index
    %3 = vector.load %arg10[%c0, %c0_1] : memref<16x32xf32, #tpu.memory_space<vmem>>, vector<16x32xf32>
    %c0_2 = arith.constant 0 : index
    %c0_3 = arith.constant 0 : index
    %4 = vector.load %arg3[%c0_2, %c0_3] : memref<16x32xbf16, #tpu.memory_space<vmem>>, vector<16x32xbf16>
    %c0_4 = arith.constant 0 : index
    %c0_5 = arith.constant 0 : index
    %5 = vector.load %arg4[%c0_4, %c0_5] : memref<32x32xbf16, #tpu.memory_space<vmem>>, vector<32x32xbf16>
    %cst = arith.constant dense<0.000000e+00> : vector<16x32xf32>
    %6 = tpu.matmul %4, %5, %cst {dimension_numbers = #tpu.dot_dimension_numbers<[1], [0], [0], [1], [0, 0, 1, 1], [], []>} : vector<16x32xbf16>, vector<32x32xbf16>, vector<16x32xf32> -> vector<16x32xf32>
    %7 = arith.addf %3, %6 : vector<16x32xf32>
    %c0_6 = arith.constant 0 : index
    %c0_7 = arith.constant 0 : index
    %8 = vector.load %arg10[%c0_6, %c0_7] : memref<16x32xf32, #tpu.memory_space<vmem>>, vector<16x32xf32>
    tpu.vector_store %arg10[%c0_6, %c0_7], %7 {strides = array<i32>} : memref<16x32xf32, #tpu.memory_space<vmem>>, vector<16x32xf32>,
    %c0_i32_8 = arith.constant 0 : i32
    %9 = arith.cmpi eq, %arg2, %c0_i32_8 : i32
    %10 = arith.extui %9 : i1 to i32
    %c0_i32_9 = arith.constant 0 : i32
    %11 = arith.cmpi ne, %10, %c0_i32_9 : i32
    scf.if %11 {
      %c0_10 = arith.constant 0 : index
      %c0_11 = arith.constant 0 : index
      %12 = vector.load %arg10[%c0_10, %c0_11] : memref<16x32xf32, #tpu.memory_space<vmem>>, vector<16x32xf32>
      %c0_12 = arith.constant 0 : index
      %c0_13 = arith.constant 0 : index
      %13 = vector.load %arg5[%c0_12, %c0_13] : memref<1x32xf32, #tpu.memory_space<vmem>>, vector<1x32xf32>
      %14 = vector.broadcast %13 : vector<1x32xf32> to vector<16x32xf32>
      %15 = arith.addf %12, %14 : vector<16x32xf32>
      %c0_14 = arith.constant 0 : index
      %c0_15 = arith.constant 0 : index
      %16 = vector.load %arg6[%c0_14, %c0_15] : memref<16x32xbf16, #tpu.memory_space<vmem>>, vector<16x32xbf16>
      %17 = arith.extf %16 : vector<16x32xbf16> to vector<16x32xf32>
      %18 = arith.addf %15, %17 : vector<16x32xf32>
      %cst_16 = arith.constant dense<0.000000e+00> : vector<16xf32>
      %19 = vector.multi_reduction <add>, %18, %cst_16 [1] : vector<16x32xf32> to vector<16xf32>
      %20 = vector.shape_cast %19 : vector<16xf32> to vector<16x1xf32>
      %cst_17 = arith.constant 3.200000e+01 : f32
      %21 = vector.broadcast %cst_17 : f32 to vector<16x1xf32>
      %22 = arith.divf %20, %21 : vector<16x1xf32>
      %23 = vector.broadcast %22 : vector<16x1xf32> to vector<16x32xf32>
      %24 = arith.subf %18, %23 : vector<16x32xf32>
      %25 = arith.mulf %24, %24 : vector<16x32xf32>
      %cst_18 = arith.constant dense<0.000000e+00> : vector<16xf32>
      %26 = vector.multi_reduction <add>, %25, %cst_18 [1] : vector<16x32xf32> to vector<16xf32>
      %27 = vector.shape_cast %26 : vector<16xf32> to vector<16x1xf32>
      %cst_19 = arith.constant 3.200000e+01 : f32
      %28 = vector.broadcast %cst_19 : f32 to vector<16x1xf32>
      %29 = arith.divf %27, %28 : vector<16x1xf32>
      %cst_20 = arith.constant 9.99999974E-6 : f32
      %30 = vector.broadcast %cst_20 : f32 to vector<16x1xf32>
      %31 = arith.addf %29, %30 : vector<16x1xf32>
      %32 = math.rsqrt %31 : vector<16x1xf32>
      %33 = vector.broadcast %32 : vector<16x1xf32> to vector<16x32xf32>
      %34 = arith.mulf %24, %33 : vector<16x32xf32>
      %c0_21 = arith.constant 0 : index
      %c0_22 = arith.constant 0 : index
      %35 = vector.load %arg7[%c0_21, %c0_22] : memref<1x32xf32, #tpu.memory_space<vmem>>, vector<1x32xf32>
      %36 = vector.broadcast %35 : vector<1x32xf32> to vector<16x32xf32>
      %37 = arith.mulf %34, %36 : vector<16x32xf32>
      %c0_23 = arith.constant 0 : index
      %c0_24 = arith.constant 0 : index
      %38 = vector.load %arg8[%c0_23, %c0_24] : memref<1x32xf32, #tpu.memory_space<vmem>>, vector<1x32xf32>
      %39 = vector.broadcast %38 : vector<1x32xf32> to vector<16x32xf32>
      %40 = arith.addf %37, %39 : vector<16x32xf32>
      %41 = arith.truncf %40 : vector<16x32xf32> to vector<16x32xbf16>
      %c0_25 = arith.constant 0 : index
      %c0_26 = arith.constant 0 : index
      %42 = vector.load %arg9[%c0_25, %c0_26] : memref<16x32xbf16, #tpu.memory_space<vmem>>, vector<16x32xbf16>
      tpu.vector_store %arg9[%c0_25, %c0_26], %41 {strides = array<i32>} : memref<16x32xbf16, #tpu.memory_space<vmem>>, vector<16x32xbf16>,
    } else {
    }
    return
  }
  func.func @transform_0(%arg0: i32, %arg1: i32, %arg2: i32) -> (i32, i32) {
    %c0_i32 = arith.constant 0 : i32
    return %arg0, %arg2 : i32, i32
  }
  func.func @transform_1(%arg0: i32, %arg1: i32, %arg2: i32) -> (i32, i32) {
    %c0_i32 = arith.constant 0 : i32
    return %arg2, %arg1 : i32, i32
  }
  func.func @transform_2(%arg0: i32, %arg1: i32, %arg2: i32) -> (i32, i32) {
    %c0_i32 = arith.constant 0 : i32
    %c0_i32_0 = arith.constant 0 : i32
    return %c0_i32, %arg1 : i32, i32
  }
  func.func @transform_3(%arg0: i32, %arg1: i32, %arg2: i32) -> (i32, i32) {
    %c0_i32 = arith.constant 0 : i32
    %c0_i32_0 = arith.constant 0 : i32
    return %arg0, %c0_i32 : i32, i32
  }
  func.func @transform_4(%arg0: i32, %arg1: i32, %arg2: i32) -> (i32, i32) {
    %c0_i32 = arith.constant 0 : i32
    %c0_i32_0 = arith.constant 0 : i32
    %c0_i32_1 = arith.constant 0 : i32
    return %c0_i32, %c0_i32_0 : i32, i32
  }
  func.func @transform_5(%arg0: i32, %arg1: i32, %arg2: i32) -> (i32, i32) {
    %c0_i32 = arith.constant 0 : i32
    %c0_i32_0 = arith.constant 0 : i32
    %c0_i32_1 = arith.constant 0 : i32
    return %c0_i32, %c0_i32_0 : i32, i32
  }
  func.func @transform_6(%arg0: i32, %arg1: i32, %arg2: i32) -> (i32, i32) {
    %c0_i32 = arith.constant 0 : i32
    return %arg0, %arg1 : i32, i32
  }
}

module attributes {stable_mosaic.version = 11 : i64} {
  func.func @_moe_kernel(%arg0: i32, %arg1: i32, %arg2: i32, %arg3: memref<16x32xbf16, #tpu.memory_space<vmem>>, %arg4: memref<16x4xf32, #tpu.memory_space<vmem>>, %arg5: memref<1x32x64xbf16, #tpu.memory_space<vmem>>, %arg6: memref<1x1x64xf32, #tpu.memory_space<vmem>>, %arg7: memref<1x64x32xbf16, #tpu.memory_space<vmem>>, %arg8: memref<1x1x32xf32, #tpu.memory_space<vmem>>, %arg9: memref<1x32xf32, #tpu.memory_space<vmem>>, %arg10: memref<1x32xf32, #tpu.memory_space<vmem>>, %arg11: memref<16x32xbf16, #tpu.memory_space<vmem>>, %arg12: memref<16x32xf32, #tpu.memory_space<vmem>>) attributes {dimension_semantics = [#tpu.dimension_semantics<parallel>, #tpu.dimension_semantics<arbitrary>, #tpu.dimension_semantics<arbitrary>], iteration_bounds = array<i64: 1, 4, 1>, scalar_prefetch = 0 : i64, scratch_operands = 1 : i64, tpu.core_type = #tpu.core_type<tc>, window_params = [{transform_indices = @transform_0, window_bounds = array<i64: 16, 32>}, {transform_indices = @transform_1, window_bounds = array<i64: 16, 4>}, {transform_indices = @transform_2, window_bounds = array<i64: 1, 32, 64>}, {transform_indices = @transform_3, window_bounds = array<i64: 1, 1, 64>}, {transform_indices = @transform_4, window_bounds = array<i64: 1, 64, 32>}, {transform_indices = @transform_5, window_bounds = array<i64: 1, 1, 32>}, {pipeline_mode = #tpu.pipeline_mode<synchronous>, transform_indices = @transform_6, window_bounds = array<i64: 1, 32>}, {pipeline_mode = #tpu.pipeline_mode<synchronous>, transform_indices = @transform_7, window_bounds = array<i64: 1, 32>}, {transform_indices = @transform_8, window_bounds = array<i64: 16, 32>}]} {
    %c0_i32 = arith.constant 0 : i32
    %0 = arith.cmpi eq, %arg1, %c0_i32 : i32
    %c0_i32_0 = arith.constant 0 : i32
    %1 = arith.cmpi eq, %arg2, %c0_i32_0 : i32
    %2 = arith.andi %0, %1 : i1
    %3 = arith.extui %2 : i1 to i32
    %c0_i32_1 = arith.constant 0 : i32
    %4 = arith.cmpi ne, %3, %c0_i32_1 : i32
    scf.if %4 {
      %cst_29 = arith.constant 0.000000e+00 : f32
      %44 = vector.broadcast %cst_29 : f32 to vector<16x32xf32>
      %c0_30 = arith.constant 0 : index
      %c0_31 = arith.constant 0 : index
      %45 = vector.load %arg12[%c0_30, %c0_31] : memref<16x32xf32, #tpu.memory_space<vmem>>, vector<16x32xf32>
      tpu.vector_store %arg12[%c0_30, %c0_31], %44 {strides = array<i32>} : memref<16x32xf32, #tpu.memory_space<vmem>>, vector<16x32xf32>,
    } else {
    }
    %c0 = arith.constant 0 : index
    %c0_2 = arith.constant 0 : index
    %5 = vector.load %arg3[%c0, %c0_2] : memref<16x32xbf16, #tpu.memory_space<vmem>>, vector<16x32xbf16>
    %c0_3 = arith.constant 0 : index
    %c0_4 = arith.constant 0 : index
    %c0_5 = arith.constant 0 : index
    %6 = vector.load %arg5[%c0_3, %c0_4, %c0_5] : memref<1x32x64xbf16, #tpu.memory_space<vmem>>, vector<1x32x64xbf16>
    %7 = vector.shape_cast %6 : vector<1x32x64xbf16> to vector<32x64xbf16>
    %cst = arith.constant dense<0.000000e+00> : vector<16x64xf32>
    %8 = tpu.matmul %5, %7, %cst {dimension_numbers = #tpu.dot_dimension_numbers<[1], [0], [0], [1], [0, 0, 1, 1], [], []>} : vector<16x32xbf16>, vector<32x64xbf16>, vector<16x64xf32> -> vector<16x64xf32>
    %c0_6 = arith.constant 0 : index
    %c0_7 = arith.constant 0 : index
    %c0_8 = arith.constant 0 : index
    %9 = vector.load %arg6[%c0_6, %c0_7, %c0_8] : memref<1x1x64xf32, #tpu.memory_space<vmem>>, vector<1x1x64xf32>
    %10 = vector.shape_cast %9 : vector<1x1x64xf32> to vector<1x64xf32>
    %11 = vector.broadcast %10 : vector<1x64xf32> to vector<16x64xf32>
    %12 = arith.addf %8, %11 : vector<16x64xf32>
    %cst_9 = arith.constant 0.000000e+00 : f32
    %13 = vector.broadcast %cst_9 : f32 to vector<16x64xf32>
    %14 = arith.maximumf %12, %13 : vector<16x64xf32>
    %15 = arith.truncf %14 : vector<16x64xf32> to vector<16x64xbf16>
    %c0_10 = arith.constant 0 : index
    %c0_11 = arith.constant 0 : index
    %c0_12 = arith.constant 0 : index
    %16 = vector.load %arg7[%c0_10, %c0_11, %c0_12] : memref<1x64x32xbf16, #tpu.memory_space<vmem>>, vector<1x64x32xbf16>
    %17 = vector.shape_cast %16 : vector<1x64x32xbf16> to vector<64x32xbf16>
    %cst_13 = arith.constant dense<0.000000e+00> : vector<16x32xf32>
    %18 = tpu.matmul %15, %17, %cst_13 {dimension_numbers = #tpu.dot_dimension_numbers<[1], [0], [0], [1], [0, 0, 1, 1], [], []>} : vector<16x64xbf16>, vector<64x32xbf16>, vector<16x32xf32> -> vector<16x32xf32>
    %c0_i32_14 = arith.constant 0 : i32
    %19 = arith.cmpi eq, %arg2, %c0_i32_14 : i32
    %c0_15 = arith.constant 0 : index
    %c0_16 = arith.constant 0 : index
    %c0_17 = arith.constant 0 : index
    %20 = vector.load %arg8[%c0_15, %c0_16, %c0_17] : memref<1x1x32xf32, #tpu.memory_space<vmem>>, vector<1x1x32xf32>
    %21 = vector.shape_cast %20 : vector<1x1x32xf32> to vector<1x32xf32>
    %cst_18 = arith.constant 0.000000e+00 : f32
    %22 = vector.broadcast %cst_18 : f32 to vector<1x32xf32>
    %23 = arith.select %19, %21, %22 : vector<1x32xf32>
    %24 = vector.broadcast %23 : vector<1x32xf32> to vector<16x32xf32>
    %25 = arith.addf %18, %24 : vector<16x32xf32>
    %c0_19 = arith.constant 0 : index
    %c0_20 = arith.constant 0 : index
    %26 = vector.load %arg4[%c0_19, %c0_20] : memref<16x4xf32, #tpu.memory_space<vmem>>, vector<16x4xf32>
    %27 = tpu.iota {dimensions = array<i32: 1>} : vector<16x4xi32>
    %28 = vector.broadcast %arg1 : i32 to vector<16x4xi32>
    %29 = arith.cmpi eq, %27, %28 : vector<16x4xi32>
    %cst_21 = arith.constant 0.000000e+00 : f32
    %30 = vector.broadcast %cst_21 : f32 to vector<16x4xf32>
    %31 = arith.select %29, %26, %30 : vector<16x4xi1>, vector<16x4xf32>
    %cst_22 = arith.constant dense<0.000000e+00> : vector<16xf32>
    %32 = vector.multi_reduction <add>, %31, %cst_22 [1] : vector<16x4xf32> to vector<16xf32>
    %33 = vector.shape_cast %32 : vector<16xf32> to vector<16x1xf32>
    %c0_23 = arith.constant 0 : index
    %c0_24 = arith.constant 0 : index
    %34 = vector.load %arg12[%c0_23, %c0_24] : memref<16x32xf32, #tpu.memory_space<vmem>>, vector<16x32xf32>
    %35 = vector.broadcast %33 : vector<16x1xf32> to vector<16x32xf32>
    %36 = arith.mulf %35, %25 : vector<16x32xf32>
    %37 = arith.addf %34, %36 : vector<16x32xf32>
    %c0_25 = arith.constant 0 : index
    %c0_26 = arith.constant 0 : index
    %38 = vector.load %arg12[%c0_25, %c0_26] : memref<16x32xf32, #tpu.memory_space<vmem>>, vector<16x32xf32>
    tpu.vector_store %arg12[%c0_25, %c0_26], %37 {strides = array<i32>} : memref<16x32xf32, #tpu.memory_space<vmem>>, vector<16x32xf32>,
    %c3_i32 = arith.constant 3 : i32
    %39 = arith.cmpi eq, %arg1, %c3_i32 : i32
    %c0_i32_27 = arith.constant 0 : i32
    %40 = arith.cmpi eq, %arg2, %c0_i32_27 : i32
    %41 = arith.andi %39, %40 : i1
    %42 = arith.extui %41 : i1 to i32
    %c0_i32_28 = arith.constant 0 : i32
    %43 = arith.cmpi ne, %42, %c0_i32_28 : i32
    scf.if %43 {
      %c0_29 = arith.constant 0 : index
      %c0_30 = arith.constant 0 : index
      %44 = vector.load %arg12[%c0_29, %c0_30] : memref<16x32xf32, #tpu.memory_space<vmem>>, vector<16x32xf32>
      %c0_31 = arith.constant 0 : index
      %c0_32 = arith.constant 0 : index
      %45 = vector.load %arg3[%c0_31, %c0_32] : memref<16x32xbf16, #tpu.memory_space<vmem>>, vector<16x32xbf16>
      %46 = arith.extf %45 : vector<16x32xbf16> to vector<16x32xf32>
      %47 = arith.addf %44, %46 : vector<16x32xf32>
      %cst_33 = arith.constant dense<0.000000e+00> : vector<16xf32>
      %48 = vector.multi_reduction <add>, %47, %cst_33 [1] : vector<16x32xf32> to vector<16xf32>
      %49 = vector.shape_cast %48 : vector<16xf32> to vector<16x1xf32>
      %cst_34 = arith.constant 3.200000e+01 : f32
      %50 = vector.broadcast %cst_34 : f32 to vector<16x1xf32>
      %51 = arith.divf %49, %50 : vector<16x1xf32>
      %52 = vector.broadcast %51 : vector<16x1xf32> to vector<16x32xf32>
      %53 = arith.subf %47, %52 : vector<16x32xf32>
      %54 = arith.mulf %53, %53 : vector<16x32xf32>
      %cst_35 = arith.constant dense<0.000000e+00> : vector<16xf32>
      %55 = vector.multi_reduction <add>, %54, %cst_35 [1] : vector<16x32xf32> to vector<16xf32>
      %56 = vector.shape_cast %55 : vector<16xf32> to vector<16x1xf32>
      %cst_36 = arith.constant 3.200000e+01 : f32
      %57 = vector.broadcast %cst_36 : f32 to vector<16x1xf32>
      %58 = arith.divf %56, %57 : vector<16x1xf32>
      %cst_37 = arith.constant 9.99999974E-6 : f32
      %59 = vector.broadcast %cst_37 : f32 to vector<16x1xf32>
      %60 = arith.addf %58, %59 : vector<16x1xf32>
      %61 = math.rsqrt %60 : vector<16x1xf32>
      %62 = vector.broadcast %61 : vector<16x1xf32> to vector<16x32xf32>
      %63 = arith.mulf %53, %62 : vector<16x32xf32>
      %c0_38 = arith.constant 0 : index
      %c0_39 = arith.constant 0 : index
      %64 = vector.load %arg9[%c0_38, %c0_39] : memref<1x32xf32, #tpu.memory_space<vmem>>, vector<1x32xf32>
      %65 = vector.broadcast %64 : vector<1x32xf32> to vector<16x32xf32>
      %66 = arith.mulf %63, %65 : vector<16x32xf32>
      %c0_40 = arith.constant 0 : index
      %c0_41 = arith.constant 0 : index
      %67 = vector.load %arg10[%c0_40, %c0_41] : memref<1x32xf32, #tpu.memory_space<vmem>>, vector<1x32xf32>
      %68 = vector.broadcast %67 : vector<1x32xf32> to vector<16x32xf32>
      %69 = arith.addf %66, %68 : vector<16x32xf32>
      %70 = arith.truncf %69 : vector<16x32xf32> to vector<16x32xbf16>
      %c0_42 = arith.constant 0 : index
      %c0_43 = arith.constant 0 : index
      %71 = vector.load %arg11[%c0_42, %c0_43] : memref<16x32xbf16, #tpu.memory_space<vmem>>, vector<16x32xbf16>
      tpu.vector_store %arg11[%c0_42, %c0_43], %70 {strides = array<i32>} : memref<16x32xbf16, #tpu.memory_space<vmem>>, vector<16x32xbf16>,
    } else {
    }
    return
  }
  func.func @transform_0(%arg0: i32, %arg1: i32, %arg2: i32) -> (i32, i32) {
    %c0_i32 = arith.constant 0 : i32
    %c0_i32_0 = arith.constant 0 : i32
    return %arg0, %c0_i32 : i32, i32
  }
  func.func @transform_1(%arg0: i32, %arg1: i32, %arg2: i32) -> (i32, i32) {
    %c0_i32 = arith.constant 0 : i32
    %c0_i32_0 = arith.constant 0 : i32
    return %arg0, %c0_i32 : i32, i32
  }
  func.func @transform_2(%arg0: i32, %arg1: i32, %arg2: i32) -> (i32, i32, i32) {
    %c0_i32 = arith.constant 0 : i32
    %c0_i32_0 = arith.constant 0 : i32
    return %arg1, %c0_i32, %arg2 : i32, i32, i32
  }
  func.func @transform_3(%arg0: i32, %arg1: i32, %arg2: i32) -> (i32, i32, i32) {
    %c0_i32 = arith.constant 0 : i32
    %c0_i32_0 = arith.constant 0 : i32
    return %arg1, %c0_i32, %arg2 : i32, i32, i32
  }
  func.func @transform_4(%arg0: i32, %arg1: i32, %arg2: i32) -> (i32, i32, i32) {
    %c0_i32 = arith.constant 0 : i32
    %c0_i32_0 = arith.constant 0 : i32
    return %arg1, %arg2, %c0_i32 : i32, i32, i32
  }
  func.func @transform_5(%arg0: i32, %arg1: i32, %arg2: i32) -> (i32, i32, i32) {
    %c0_i32 = arith.constant 0 : i32
    %c0_i32_0 = arith.constant 0 : i32
    %c0_i32_1 = arith.constant 0 : i32
    return %arg1, %c0_i32, %c0_i32_0 : i32, i32, i32
  }
  func.func @transform_6(%arg0: i32, %arg1: i32, %arg2: i32) -> (i32, i32) {
    %c0_i32 = arith.constant 0 : i32
    %c0_i32_0 = arith.constant 0 : i32
    %c0_i32_1 = arith.constant 0 : i32
    return %c0_i32, %c0_i32_0 : i32, i32
  }
  func.func @transform_7(%arg0: i32, %arg1: i32, %arg2: i32) -> (i32, i32) {
    %c0_i32 = arith.constant 0 : i32
    %c0_i32_0 = arith.constant 0 : i32
    %c0_i32_1 = arith.constant 0 : i32
    return %c0_i32, %c0_i32_0 : i32, i32
  }
  func.func @transform_8(%arg0: i32, %arg1: i32, %arg2: i32) -> (i32, i32) {
    %c0_i32 = arith.constant 0 : i32
    %c0_i32_0 = arith.constant 0 : i32
    return %arg0, %c0_i32 : i32, i32
  }
}

module attributes {stable_mosaic.version = 11 : i64} {
  func.func @_linear_kernel(%arg0: i32, %arg1: i32, %arg2: i32, %arg3: memref<16x32xbf16, #tpu.memory_space<vmem>>, %arg4: memref<32x64xbf16, #tpu.memory_space<vmem>>, %arg5: memref<1x64xf32, #tpu.memory_space<vmem>>, %arg6: memref<16x64xf32, #tpu.memory_space<vmem>>, %arg7: memref<16x64xf32, #tpu.memory_space<vmem>>) attributes {dimension_semantics = [#tpu.dimension_semantics<parallel>, #tpu.dimension_semantics<parallel>, #tpu.dimension_semantics<arbitrary>], iteration_bounds = array<i64: 1, 1, 1>, scalar_prefetch = 0 : i64, scratch_operands = 1 : i64, tpu.core_type = #tpu.core_type<tc>, window_params = [{transform_indices = @transform_0, window_bounds = array<i64: 16, 32>}, {transform_indices = @transform_1, window_bounds = array<i64: 32, 64>}, {transform_indices = @transform_2, window_bounds = array<i64: 1, 64>}, {transform_indices = @transform_3, window_bounds = array<i64: 16, 64>}]} {
    %c0_i32 = arith.constant 0 : i32
    %0 = arith.cmpi eq, %arg2, %c0_i32 : i32
    %1 = arith.extui %0 : i1 to i32
    %c0_i32_0 = arith.constant 0 : i32
    %2 = arith.cmpi ne, %1, %c0_i32_0 : i32
    scf.if %2 {
      %cst_10 = arith.constant 0.000000e+00 : f32
      %12 = vector.broadcast %cst_10 : f32 to vector<16x64xf32>
      %c0_11 = arith.constant 0 : index
      %c0_12 = arith.constant 0 : index
      %13 = vector.load %arg7[%c0_11, %c0_12] : memref<16x64xf32, #tpu.memory_space<vmem>>, vector<16x64xf32>
      tpu.vector_store %arg7[%c0_11, %c0_12], %12 {strides = array<i32>} : memref<16x64xf32, #tpu.memory_space<vmem>>, vector<16x64xf32>,
    } else {
    }
    %c0 = arith.constant 0 : index
    %c0_1 = arith.constant 0 : index
    %3 = vector.load %arg7[%c0, %c0_1] : memref<16x64xf32, #tpu.memory_space<vmem>>, vector<16x64xf32>
    %c0_2 = arith.constant 0 : index
    %c0_3 = arith.constant 0 : index
    %4 = vector.load %arg3[%c0_2, %c0_3] : memref<16x32xbf16, #tpu.memory_space<vmem>>, vector<16x32xbf16>
    %c0_4 = arith.constant 0 : index
    %c0_5 = arith.constant 0 : index
    %5 = vector.load %arg4[%c0_4, %c0_5] : memref<32x64xbf16, #tpu.memory_space<vmem>>, vector<32x64xbf16>
    %cst = arith.constant dense<0.000000e+00> : vector<16x64xf32>
    %6 = tpu.matmul %4, %5, %cst {dimension_numbers = #tpu.dot_dimension_numbers<[1], [0], [0], [1], [0, 0, 1, 1], [], []>} : vector<16x32xbf16>, vector<32x64xbf16>, vector<16x64xf32> -> vector<16x64xf32>
    %7 = arith.addf %3, %6 : vector<16x64xf32>
    %c0_6 = arith.constant 0 : index
    %c0_7 = arith.constant 0 : index
    %8 = vector.load %arg7[%c0_6, %c0_7] : memref<16x64xf32, #tpu.memory_space<vmem>>, vector<16x64xf32>
    tpu.vector_store %arg7[%c0_6, %c0_7], %7 {strides = array<i32>} : memref<16x64xf32, #tpu.memory_space<vmem>>, vector<16x64xf32>,
    %c0_i32_8 = arith.constant 0 : i32
    %9 = arith.cmpi eq, %arg2, %c0_i32_8 : i32
    %10 = arith.extui %9 : i1 to i32
    %c0_i32_9 = arith.constant 0 : i32
    %11 = arith.cmpi ne, %10, %c0_i32_9 : i32
    scf.if %11 {
      %c0_10 = arith.constant 0 : index
      %c0_11 = arith.constant 0 : index
      %12 = vector.load %arg7[%c0_10, %c0_11] : memref<16x64xf32, #tpu.memory_space<vmem>>, vector<16x64xf32>
      %c0_12 = arith.constant 0 : index
      %c0_13 = arith.constant 0 : index
      %13 = vector.load %arg5[%c0_12, %c0_13] : memref<1x64xf32, #tpu.memory_space<vmem>>, vector<1x64xf32>
      %14 = vector.broadcast %13 : vector<1x64xf32> to vector<16x64xf32>
      %15 = arith.addf %12, %14 : vector<16x64xf32>
      %c0_14 = arith.constant 0 : index
      %c0_15 = arith.constant 0 : index
      %16 = vector.load %arg6[%c0_14, %c0_15] : memref<16x64xf32, #tpu.memory_space<vmem>>, vector<16x64xf32>
      tpu.vector_store %arg6[%c0_14, %c0_15], %15 {strides = array<i32>} : memref<16x64xf32, #tpu.memory_space<vmem>>, vector<16x64xf32>,
    } else {
    }
    return
  }
  func.func @transform_0(%arg0: i32, %arg1: i32, %arg2: i32) -> (i32, i32) {
    %c0_i32 = arith.constant 0 : i32
    return %arg0, %arg2 : i32, i32
  }
  func.func @transform_1(%arg0: i32, %arg1: i32, %arg2: i32) -> (i32, i32) {
    %c0_i32 = arith.constant 0 : i32
    return %arg2, %arg1 : i32, i32
  }
  func.func @transform_2(%arg0: i32, %arg1: i32, %arg2: i32) -> (i32, i32) {
    %c0_i32 = arith.constant 0 : i32
    %c0_i32_0 = arith.constant 0 : i32
    return %c0_i32, %arg1 : i32, i32
  }
  func.func @transform_3(%arg0: i32, %arg1: i32, %arg2: i32) -> (i32, i32) {
    %c0_i32 = arith.constant 0 : i32
    return %arg0, %arg1 : i32, i32
  }
}

module attributes {stable_mosaic.version = 11 : i64} {
  func.func @_attn_kernel(%arg0: i32, %arg1: i32, %arg2: memref<1x8x32xbf16, #tpu.memory_space<vmem>>, %arg3: memref<1x8x64xbf16, #tpu.memory_space<vmem>>, %arg4: memref<8x32xf32, #tpu.memory_space<vmem>>, %arg5: memref<8x32xf32, #tpu.memory_space<vmem>>, %arg6: memref<8x32xf32, #tpu.memory_space<vmem>>, %arg7: memref<8x32xf32, #tpu.memory_space<vmem>>, %arg8: memref<1x8x32xbf16, #tpu.memory_space<vmem>>) attributes {dimension_semantics = [#tpu.dimension_semantics<parallel>, #tpu.dimension_semantics<parallel>], iteration_bounds = array<i64: 2, 1>, scalar_prefetch = 0 : i64, scratch_operands = 0 : i64, tpu.core_type = #tpu.core_type<tc>, window_params = [{transform_indices = @transform_0, window_bounds = array<i64: 1, 8, 32>}, {transform_indices = @transform_1, window_bounds = array<i64: 1, 8, 64>}, {transform_indices = @transform_2, window_bounds = array<i64: 8, 32>}, {transform_indices = @transform_3, window_bounds = array<i64: 8, 32>}, {pipeline_mode = #tpu.pipeline_mode<synchronous>, transform_indices = @transform_4, window_bounds = array<i64: 8, 32>}, {pipeline_mode = #tpu.pipeline_mode<synchronous>, transform_indices = @transform_5, window_bounds = array<i64: 8, 32>}, {transform_indices = @transform_6, window_bounds = array<i64: 1, 8, 32>}]} {
    %c0 = arith.constant 0 : index
    %c0_0 = arith.constant 0 : index
    %c0_1 = arith.constant 0 : index
    %0 = vector.load %arg3[%c0, %c0_0, %c0_1] : memref<1x8x64xbf16, #tpu.memory_space<vmem>>, vector<1x8x64xbf16>
    %1 = vector.shape_cast %0 : vector<1x8x64xbf16> to vector<8x64xbf16>
    %c0_2 = arith.constant 0 : index
    %c0_3 = arith.constant 0 : index
    %c0_4 = arith.constant 0 : index
    %2 = vector.load %arg2[%c0_2, %c0_3, %c0_4] : memref<1x8x32xbf16, #tpu.memory_space<vmem>>, vector<1x8x32xbf16>
    %3 = vector.shape_cast %2 : vector<1x8x32xbf16> to vector<8x32xbf16>
    %4 = arith.extf %3 : vector<8x32xbf16> to vector<8x32xf32>
    %c0_5 = arith.constant 0 : index
    %c0_6 = arith.constant 0 : index
    %5 = vector.load %arg4[%c0_5, %c0_6] : memref<8x32xf32, #tpu.memory_space<vmem>>, vector<8x32xf32>
    %c0_7 = arith.constant 0 : index
    %c0_8 = arith.constant 0 : index
    %6 = vector.load %arg5[%c0_7, %c0_8] : memref<8x32xf32, #tpu.memory_space<vmem>>, vector<8x32xf32>
    %7 = vector.extract_strided_slice %4 {offsets = [0, 4], sizes = [8, 4], strides = [1, 1]} : vector<8x32xf32> to vector<8x4xf32>
    %cst = arith.constant 0.000000e+00 : f32
    %8 = vector.broadcast %cst : f32 to vector<8x4xf32>
    %9 = arith.subf %8, %7 : vector<8x4xf32>
    %10 = vector.extract_strided_slice %4 {offsets = [0, 0], sizes = [8, 4], strides = [1, 1]} : vector<8x32xf32> to vector<8x4xf32>
    %11 = vector.extract_strided_slice %4 {offsets = [0, 12], sizes = [8, 4], strides = [1, 1]} : vector<8x32xf32> to vector<8x4xf32>
    %cst_9 = arith.constant 0.000000e+00 : f32
    %12 = vector.broadcast %cst_9 : f32 to vector<8x4xf32>
    %13 = arith.subf %12, %11 : vector<8x4xf32>
    %14 = vector.extract_strided_slice %4 {offsets = [0, 8], sizes = [8, 4], strides = [1, 1]} : vector<8x32xf32> to vector<8x4xf32>
    %15 = vector.extract_strided_slice %4 {offsets = [0, 20], sizes = [8, 4], strides = [1, 1]} : vector<8x32xf32> to vector<8x4xf32>
    %cst_10 = arith.constant 0.000000e+00 : f32
    %16 = vector.broadcast %cst_10 : f32 to vector<8x4xf32>
    %17 = arith.subf %16, %15 : vector<8x4xf32>
    %18 = vector.extract_strided_slice %4 {offsets = [0, 16], sizes = [8, 4], strides = [1, 1]} : vector<8x32xf32> to vector<8x4xf32>
    %19 = vector.extract_strided_slice %4 {offsets = [0, 28], sizes = [8, 4], strides = [1, 1]} : vector<8x32xf32> to vector<8x4xf32>
    %cst_11 = arith.constant 0.000000e+00 : f32
    %20 = vector.broadcast %cst_11 : f32 to vector<8x4xf32>
    %21 = arith.subf %20, %19 : vector<8x4xf32>
    %22 = vector.extract_strided_slice %4 {offsets = [0, 24], sizes = [8, 4], strides = [1, 1]} : vector<8x32xf32> to vector<8x4xf32>
    %23 = arith.mulf %4, %5 : vector<8x32xf32>
    %24 = tpu.concatenate %9, %10, %13, %14, %17, %18, %21, %22 in 1 : vector<8x4xf32>, vector<8x4xf32>, vector<8x4xf32>, vector<8x4xf32>, vector<8x4xf32>, vector<8x4xf32>, vector<8x4xf32>, vector<8x4xf32> -> vector<8x32xf32>
    %25 = arith.mulf %24, %6 : vector<8x32xf32>
    %26 = arith.addf %23, %25 : vector<8x32xf32>
    %27 = vector.extract_strided_slice %1 {offsets = [0, 0], sizes = [8, 32], strides = [1, 1]} : vector<8x64xbf16> to vector<8x32xbf16>
    %28 = arith.extf %27 : vector<8x32xbf16> to vector<8x32xf32>
    %c0_12 = arith.constant 0 : index
    %c0_13 = arith.constant 0 : index
    %29 = vector.load %arg6[%c0_12, %c0_13] : memref<8x32xf32, #tpu.memory_space<vmem>>, vector<8x32xf32>
    %c0_14 = arith.constant 0 : index
    %c0_15 = arith.constant 0 : index
    %30 = vector.load %arg7[%c0_14, %c0_15] : memref<8x32xf32, #tpu.memory_space<vmem>>, vector<8x32xf32>
    %31 = vector.extract_strided_slice %28 {offsets = [0, 4], sizes = [8, 4], strides = [1, 1]} : vector<8x32xf32> to vector<8x4xf32>
    %cst_16 = arith.constant 0.000000e+00 : f32
    %32 = vector.broadcast %cst_16 : f32 to vector<8x4xf32>
    %33 = arith.subf %32, %31 : vector<8x4xf32>
    %34 = vector.extract_strided_slice %28 {offsets = [0, 0], sizes = [8, 4], strides = [1, 1]} : vector<8x32xf32> to vector<8x4xf32>
    %35 = vector.extract_strided_slice %28 {offsets = [0, 12], sizes = [8, 4], strides = [1, 1]} : vector<8x32xf32> to vector<8x4xf32>
    %cst_17 = arith.constant 0.000000e+00 : f32
    %36 = vector.broadcast %cst_17 : f32 to vector<8x4xf32>
    %37 = arith.subf %36, %35 : vector<8x4xf32>
    %38 = vector.extract_strided_slice %28 {offsets = [0, 8], sizes = [8, 4], strides = [1, 1]} : vector<8x32xf32> to vector<8x4xf32>
    %39 = vector.extract_strided_slice %28 {offsets = [0, 20], sizes = [8, 4], strides = [1, 1]} : vector<8x32xf32> to vector<8x4xf32>
    %cst_18 = arith.constant 0.000000e+00 : f32
    %40 = vector.broadcast %cst_18 : f32 to vector<8x4xf32>
    %41 = arith.subf %40, %39 : vector<8x4xf32>
    %42 = vector.extract_strided_slice %28 {offsets = [0, 16], sizes = [8, 4], strides = [1, 1]} : vector<8x32xf32> to vector<8x4xf32>
    %43 = vector.extract_strided_slice %28 {offsets = [0, 28], sizes = [8, 4], strides = [1, 1]} : vector<8x32xf32> to vector<8x4xf32>
    %cst_19 = arith.constant 0.000000e+00 : f32
    %44 = vector.broadcast %cst_19 : f32 to vector<8x4xf32>
    %45 = arith.subf %44, %43 : vector<8x4xf32>
    %46 = vector.extract_strided_slice %28 {offsets = [0, 24], sizes = [8, 4], strides = [1, 1]} : vector<8x32xf32> to vector<8x4xf32>
    %47 = arith.mulf %28, %29 : vector<8x32xf32>
    %48 = tpu.concatenate %33, %34, %37, %38, %41, %42, %45, %46 in 1 : vector<8x4xf32>, vector<8x4xf32>, vector<8x4xf32>, vector<8x4xf32>, vector<8x4xf32>, vector<8x4xf32>, vector<8x4xf32>, vector<8x4xf32> -> vector<8x32xf32>
    %49 = arith.mulf %48, %30 : vector<8x32xf32>
    %50 = arith.addf %47, %49 : vector<8x32xf32>
    %51 = arith.truncf %26 : vector<8x32xf32> to vector<8x32xbf16>
    %52 = arith.truncf %50 : vector<8x32xf32> to vector<8x32xbf16>
    %53 = vector.extract_strided_slice %1 {offsets = [0, 32], sizes = [8, 32], strides = [1, 1]} : vector<8x64xbf16> to vector<8x32xbf16>
    %c8_i32 = arith.constant 8 : i32
    %54 = arith.muli %arg1, %c8_i32 : i32
    %55 = tpu.iota {dimensions = array<i32: 0>} : vector<8x8xi32>
    %56 = vector.broadcast %54 : i32 to vector<8x8xi32>
    %57 = arith.addi %56, %55 : vector<8x8xi32>
    %58 = tpu.iota {dimensions = array<i32: 1>} : vector<8x8xi32>
    %59 = arith.cmpi sgt, %58, %57 : vector<8x8xi32>
    %60 = vector.extract_strided_slice %51 {offsets = [0, 0], sizes = [8, 8], strides = [1, 1]} : vector<8x32xbf16> to vector<8x8xbf16>
    %61 = vector.extract_strided_slice %52 {offsets = [0, 0], sizes = [8, 8], strides = [1, 1]} : vector<8x32xbf16> to vector<8x8xbf16>
    %cst_20 = arith.constant dense<0.000000e+00> : vector<8x8xf32>
    %62 = tpu.matmul %60, %61, %cst_20 {dimension_numbers = #tpu.dot_dimension_numbers<[1], [1], [0], [0], [0, 0, 1, 0], [], []>} : vector<8x8xbf16>, vector<8x8xbf16>, vector<8x8xf32> -> vector<8x8xf32>
    %cst_21 = arith.constant 0.353553385 : f32
    %63 = vector.broadcast %cst_21 : f32 to vector<8x8xf32>
    %64 = arith.mulf %62, %63 : vector<8x8xf32>
    %cst_22 = arith.constant -1.000000e+30 : f32
    %65 = vector.broadcast %cst_22 : f32 to vector<8x8xf32>
    %66 = arith.select %59, %65, %64 : vector<8x8xi1>, vector<8x8xf32>
    %cst_23 = arith.constant dense<0xFF800000> : vector<8xf32>
    %67 = vector.multi_reduction <maximumf>, %66, %cst_23 [1] : vector<8x8xf32> to vector<8xf32>
    %68 = vector.shape_cast %67 : vector<8xf32> to vector<8x1xf32>
    %69 = vector.broadcast %68 : vector<8x1xf32> to vector<8x8xf32>
    %70 = arith.subf %66, %69 : vector<8x8xf32>
    %71 = math.exp %70 : vector<8x8xf32>
    %cst_24 = arith.constant dense<0.000000e+00> : vector<8xf32>
    %72 = vector.multi_reduction <add>, %71, %cst_24 [1] : vector<8x8xf32> to vector<8xf32>
    %73 = vector.shape_cast %72 : vector<8xf32> to vector<8x1xf32>
    %74 = tpu.reciprocal %73 {approx = true} : vector<8x1xf32> -> vector<8x1xf32>
    %75 = vector.broadcast %74 : vector<8x1xf32> to vector<8x8xf32>
    %76 = arith.mulf %71, %75 : vector<8x8xf32>
    %77 = arith.truncf %76 : vector<8x8xf32> to vector<8x8xbf16>
    %78 = vector.extract_strided_slice %53 {offsets = [0, 0], sizes = [8, 8], strides = [1, 1]} : vector<8x32xbf16> to vector<8x8xbf16>
    %cst_25 = arith.constant dense<0.000000e+00> : vector<8x8xf32>
    %79 = tpu.matmul %77, %78, %cst_25 {dimension_numbers = #tpu.dot_dimension_numbers<[1], [0], [0], [1], [0, 0, 1, 1], [], []>} : vector<8x8xbf16>, vector<8x8xbf16>, vector<8x8xf32> -> vector<8x8xf32>
    %80 = arith.truncf %79 : vector<8x8xf32> to vector<8x8xbf16>
    %c0_26 = arith.constant 0 : index
    %c0_27 = arith.constant 0 : index
    %c0_28 = arith.constant 0 : index
    %81 = vector.load %arg8[%c0_26, %c0_27, %c0_28] : memref<1x8x32xbf16, #tpu.memory_space<vmem>>, vector<1x8x8xbf16>
    %82 = vector.shape_cast %81 : vector<1x8x8xbf16> to vector<8x8xbf16>
    %83 = vector.shape_cast %80 : vector<8x8xbf16> to vector<1x8x8xbf16>
    tpu.vector_store %arg8[%c0_26, %c0_27, %c0_28], %83 {strides = array<i32>} : memref<1x8x32xbf16, #tpu.memory_space<vmem>>, vector<1x8x8xbf16>,
    %84 = vector.extract_strided_slice %51 {offsets = [0, 8], sizes = [8, 8], strides = [1, 1]} : vector<8x32xbf16> to vector<8x8xbf16>
    %85 = vector.extract_strided_slice %52 {offsets = [0, 8], sizes = [8, 8], strides = [1, 1]} : vector<8x32xbf16> to vector<8x8xbf16>
    %cst_29 = arith.constant dense<0.000000e+00> : vector<8x8xf32>
    %86 = tpu.matmul %84, %85, %cst_29 {dimension_numbers = #tpu.dot_dimension_numbers<[1], [1], [0], [0], [0, 0, 1, 0], [], []>} : vector<8x8xbf16>, vector<8x8xbf16>, vector<8x8xf32> -> vector<8x8xf32>
    %cst_30 = arith.constant 0.353553385 : f32
    %87 = vector.broadcast %cst_30 : f32 to vector<8x8xf32>
    %88 = arith.mulf %86, %87 : vector<8x8xf32>
    %cst_31 = arith.constant -1.000000e+30 : f32
    %89 = vector.broadcast %cst_31 : f32 to vector<8x8xf32>
    %90 = arith.select %59, %89, %88 : vector<8x8xi1>, vector<8x8xf32>
    %cst_32 = arith.constant dense<0xFF800000> : vector<8xf32>
    %91 = vector.multi_reduction <maximumf>, %90, %cst_32 [1] : vector<8x8xf32> to vector<8xf32>
    %92 = vector.shape_cast %91 : vector<8xf32> to vector<8x1xf32>
    %93 = vector.broadcast %92 : vector<8x1xf32> to vector<8x8xf32>
    %94 = arith.subf %90, %93 : vector<8x8xf32>
    %95 = math.exp %94 : vector<8x8xf32>
    %cst_33 = arith.constant dense<0.000000e+00> : vector<8xf32>
    %96 = vector.multi_reduction <add>, %95, %cst_33 [1] : vector<8x8xf32> to vector<8xf32>
    %97 = vector.shape_cast %96 : vector<8xf32> to vector<8x1xf32>
    %98 = tpu.reciprocal %97 {approx = true} : vector<8x1xf32> -> vector<8x1xf32>
    %99 = vector.broadcast %98 : vector<8x1xf32> to vector<8x8xf32>
    %100 = arith.mulf %95, %99 : vector<8x8xf32>
    %101 = arith.truncf %100 : vector<8x8xf32> to vector<8x8xbf16>
    %102 = vector.extract_strided_slice %53 {offsets = [0, 8], sizes = [8, 8], strides = [1, 1]} : vector<8x32xbf16> to vector<8x8xbf16>
    %cst_34 = arith.constant dense<0.000000e+00> : vector<8x8xf32>
    %103 = tpu.matmul %101, %102, %cst_34 {dimension_numbers = #tpu.dot_dimension_numbers<[1], [0], [0], [1], [0, 0, 1, 1], [], []>} : vector<8x8xbf16>, vector<8x8xbf16>, vector<8x8xf32> -> vector<8x8xf32>
    %104 = arith.truncf %103 : vector<8x8xf32> to vector<8x8xbf16>
    %c0_35 = arith.constant 0 : index
    %c0_36 = arith.constant 0 : index
    %c8 = arith.constant 8 : index
    %105 = vector.load %arg8[%c0_35, %c0_36, %c8] : memref<1x8x32xbf16, #tpu.memory_space<vmem>>, vector<1x8x8xbf16>
    %106 = vector.shape_cast %105 : vector<1x8x8xbf16> to vector<8x8xbf16>
    %107 = vector.shape_cast %104 : vector<8x8xbf16> to vector<1x8x8xbf16>
    tpu.vector_store %arg8[%c0_35, %c0_36, %c8], %107 {strides = array<i32>} : memref<1x8x32xbf16, #tpu.memory_space<vmem>>, vector<1x8x8xbf16>,
    %108 = vector.extract_strided_slice %51 {offsets = [0, 16], sizes = [8, 8], strides = [1, 1]} : vector<8x32xbf16> to vector<8x8xbf16>
    %109 = vector.extract_strided_slice %52 {offsets = [0, 16], sizes = [8, 8], strides = [1, 1]} : vector<8x32xbf16> to vector<8x8xbf16>
    %cst_37 = arith.constant dense<0.000000e+00> : vector<8x8xf32>
    %110 = tpu.matmul %108, %109, %cst_37 {dimension_numbers = #tpu.dot_dimension_numbers<[1], [1], [0], [0], [0, 0, 1, 0], [], []>} : vector<8x8xbf16>, vector<8x8xbf16>, vector<8x8xf32> -> vector<8x8xf32>
    %cst_38 = arith.constant 0.353553385 : f32
    %111 = vector.broadcast %cst_38 : f32 to vector<8x8xf32>
    %112 = arith.mulf %110, %111 : vector<8x8xf32>
    %cst_39 = arith.constant -1.000000e+30 : f32
    %113 = vector.broadcast %cst_39 : f32 to vector<8x8xf32>
    %114 = arith.select %59, %113, %112 : vector<8x8xi1>, vector<8x8xf32>
    %cst_40 = arith.constant dense<0xFF800000> : vector<8xf32>
    %115 = vector.multi_reduction <maximumf>, %114, %cst_40 [1] : vector<8x8xf32> to vector<8xf32>
    %116 = vector.shape_cast %115 : vector<8xf32> to vector<8x1xf32>
    %117 = vector.broadcast %116 : vector<8x1xf32> to vector<8x8xf32>
    %118 = arith.subf %114, %117 : vector<8x8xf32>
    %119 = math.exp %118 : vector<8x8xf32>
    %cst_41 = arith.constant dense<0.000000e+00> : vector<8xf32>
    %120 = vector.multi_reduction <add>, %119, %cst_41 [1] : vector<8x8xf32> to vector<8xf32>
    %121 = vector.shape_cast %120 : vector<8xf32> to vector<8x1xf32>
    %122 = tpu.reciprocal %121 {approx = true} : vector<8x1xf32> -> vector<8x1xf32>
    %123 = vector.broadcast %122 : vector<8x1xf32> to vector<8x8xf32>
    %124 = arith.mulf %119, %123 : vector<8x8xf32>
    %125 = arith.truncf %124 : vector<8x8xf32> to vector<8x8xbf16>
    %126 = vector.extract_strided_slice %53 {offsets = [0, 16], sizes = [8, 8], strides = [1, 1]} : vector<8x32xbf16> to vector<8x8xbf16>
    %cst_42 = arith.constant dense<0.000000e+00> : vector<8x8xf32>
    %127 = tpu.matmul %125, %126, %cst_42 {dimension_numbers = #tpu.dot_dimension_numbers<[1], [0], [0], [1], [0, 0, 1, 1], [], []>} : vector<8x8xbf16>, vector<8x8xbf16>, vector<8x8xf32> -> vector<8x8xf32>
    %128 = arith.truncf %127 : vector<8x8xf32> to vector<8x8xbf16>
    %c0_43 = arith.constant 0 : index
    %c0_44 = arith.constant 0 : index
    %c16 = arith.constant 16 : index
    %129 = vector.load %arg8[%c0_43, %c0_44, %c16] : memref<1x8x32xbf16, #tpu.memory_space<vmem>>, vector<1x8x8xbf16>
    %130 = vector.shape_cast %129 : vector<1x8x8xbf16> to vector<8x8xbf16>
    %131 = vector.shape_cast %128 : vector<8x8xbf16> to vector<1x8x8xbf16>
    tpu.vector_store %arg8[%c0_43, %c0_44, %c16], %131 {strides = array<i32>} : memref<1x8x32xbf16, #tpu.memory_space<vmem>>, vector<1x8x8xbf16>,
    %132 = vector.extract_strided_slice %51 {offsets = [0, 24], sizes = [8, 8], strides = [1, 1]} : vector<8x32xbf16> to vector<8x8xbf16>
    %133 = vector.extract_strided_slice %52 {offsets = [0, 24], sizes = [8, 8], strides = [1, 1]} : vector<8x32xbf16> to vector<8x8xbf16>
    %cst_45 = arith.constant dense<0.000000e+00> : vector<8x8xf32>
    %134 = tpu.matmul %132, %133, %cst_45 {dimension_numbers = #tpu.dot_dimension_numbers<[1], [1], [0], [0], [0, 0, 1, 0], [], []>} : vector<8x8xbf16>, vector<8x8xbf16>, vector<8x8xf32> -> vector<8x8xf32>
    %cst_46 = arith.constant 0.353553385 : f32
    %135 = vector.broadcast %cst_46 : f32 to vector<8x8xf32>
    %136 = arith.mulf %134, %135 : vector<8x8xf32>
    %cst_47 = arith.constant -1.000000e+30 : f32
    %137 = vector.broadcast %cst_47 : f32 to vector<8x8xf32>
    %138 = arith.select %59, %137, %136 : vector<8x8xi1>, vector<8x8xf32>
    %cst_48 = arith.constant dense<0xFF800000> : vector<8xf32>
    %139 = vector.multi_reduction <maximumf>, %138, %cst_48 [1] : vector<8x8xf32> to vector<8xf32>
    %140 = vector.shape_cast %139 : vector<8xf32> to vector<8x1xf32>
    %141 = vector.broadcast %140 : vector<8x1xf32> to vector<8x8xf32>
    %142 = arith.subf %138, %141 : vector<8x8xf32>
    %143 = math.exp %142 : vector<8x8xf32>
    %cst_49 = arith.constant dense<0.000000e+00> : vector<8xf32>
    %144 = vector.multi_reduction <add>, %143, %cst_49 [1] : vector<8x8xf32> to vector<8xf32>
    %145 = vector.shape_cast %144 : vector<8xf32> to vector<8x1xf32>
    %146 = tpu.reciprocal %145 {approx = true} : vector<8x1xf32> -> vector<8x1xf32>
    %147 = vector.broadcast %146 : vector<8x1xf32> to vector<8x8xf32>
    %148 = arith.mulf %143, %147 : vector<8x8xf32>
    %149 = arith.truncf %148 : vector<8x8xf32> to vector<8x8xbf16>
    %150 = vector.extract_strided_slice %53 {offsets = [0, 24], sizes = [8, 8], strides = [1, 1]} : vector<8x32xbf16> to vector<8x8xbf16>
    %cst_50 = arith.constant dense<0.000000e+00> : vector<8x8xf32>
    %151 = tpu.matmul %149, %150, %cst_50 {dimension_numbers = #tpu.dot_dimension_numbers<[1], [0], [0], [1], [0, 0, 1, 1], [], []>} : vector<8x8xbf16>, vector<8x8xbf16>, vector<8x8xf32> -> vector<8x8xf32>
    %152 = arith.truncf %151 : vector<8x8xf32> to vector<8x8xbf16>
    %c0_51 = arith.constant 0 : index
    %c0_52 = arith.constant 0 : index
    %c24 = arith.constant 24 : index
    %153 = vector.load %arg8[%c0_51, %c0_52, %c24] : memref<1x8x32xbf16, #tpu.memory_space<vmem>>, vector<1x8x8xbf16>
    %154 = vector.shape_cast %153 : vector<1x8x8xbf16> to vector<8x8xbf16>
    %155 = vector.shape_cast %152 : vector<8x8xbf16> to vector<1x8x8xbf16>
    tpu.vector_store %arg8[%c0_51, %c0_52, %c24], %155 {strides = array<i32>} : memref<1x8x32xbf16, #tpu.memory_space<vmem>>, vector<1x8x8xbf16>,
    return
  }
  func.func @transform_0(%arg0: i32, %arg1: i32) -> (i32, i32, i32) {
    %c0_i32 = arith.constant 0 : i32
    %c0_i32_0 = arith.constant 0 : i32
    return %arg0, %arg1, %c0_i32 : i32, i32, i32
  }
  func.func @transform_1(%arg0: i32, %arg1: i32) -> (i32, i32, i32) {
    %c0_i32 = arith.constant 0 : i32
    %c0_i32_0 = arith.constant 0 : i32
    %c0_i32_1 = arith.constant 0 : i32
    return %arg0, %c0_i32, %c0_i32_0 : i32, i32, i32
  }
  func.func @transform_2(%arg0: i32, %arg1: i32) -> (i32, i32) {
    %c0_i32 = arith.constant 0 : i32
    %c0_i32_0 = arith.constant 0 : i32
    return %arg1, %c0_i32 : i32, i32
  }
  func.func @transform_3(%arg0: i32, %arg1: i32) -> (i32, i32) {
    %c0_i32 = arith.constant 0 : i32
    %c0_i32_0 = arith.constant 0 : i32
    return %arg1, %c0_i32 : i32, i32
  }
  func.func @transform_4(%arg0: i32, %arg1: i32) -> (i32, i32) {
    %c0_i32 = arith.constant 0 : i32
    %c0_i32_0 = arith.constant 0 : i32
    %c0_i32_1 = arith.constant 0 : i32
    return %c0_i32, %c0_i32_0 : i32, i32
  }
  func.func @transform_5(%arg0: i32, %arg1: i32) -> (i32, i32) {
    %c0_i32 = arith.constant 0 : i32
    %c0_i32_0 = arith.constant 0 : i32
    %c0_i32_1 = arith.constant 0 : i32
    return %c0_i32, %c0_i32_0 : i32, i32
  }
  func.func @transform_6(%arg0: i32, %arg1: i32) -> (i32, i32, i32) {
    %c0_i32 = arith.constant 0 : i32
    %c0_i32_0 = arith.constant 0 : i32
    return %arg0, %arg1, %c0_i32 : i32, i32, i32
  }
}

</mosaic_0001>

<bundles_post_ra>
// kernel: transformer_forward.32
= control target key start
LH: loop header
LB: loop body
LE: loop exit
PB: predicated region body
PF: predicated region fallthrough
CT: control target
= control target key end

     0   :  { %vm28_vm0 = vcmask 261120   ;;  %v198_v1 = vmov 0.0   ;;  %v199_v22 = vmov 32.0   ;;  %vm160_vm6 = vcmask 257024   ;;  %s271_s1 = inlined_call_operand.vmem [shape: bf16[32,32], index: 1, kind: input, shape index: {}]   ;;  %s272_s0 = inlined_call_operand.vmem [shape: bf16[16,32], index: 0, kind: input, shape index: {}]   ;;  %s273_s2 = inlined_call_operand.vmem [shape: f32[1,32], index: 2, kind: input, shape index: {}]   ;;  %s274_s3 = inlined_call_operand.vmem [shape: bf16[16,32], index: 3, kind: input, shape index: {}]   ;;  %s275_s4 = inlined_call_operand.vmem [shape: f32[1,32], index: 4, kind: input, shape index: {}]   ;;  %s276_s5 = inlined_call_operand.vmem [shape: f32[1,32], index: 5, kind: input, shape index: {}]   ;;  %s277_s6 = inlined_call_operand.vmem [shape: bf16[16,32], index: 6, kind: output, shape index: {}]  }
   0x1   :  { %v182_v0 = vld [vmem:[%s271_s1 + $0x8] sm:$0xff]  ;;  %29 = vst.msk [vmem:[#allocation2] sm:$0xff] %vm28_vm0, %v198_v1  ;;  %v181_v2 = vld [vmem:[%s271_s1] sm:$0xff]  ;;  %192 = vrcp.f32 %v199_v22 }
   0x2   :  { %30 = vst.msk [vmem:[#allocation2 + $0x8] sm:$0xff] %vm28_vm0, %v198_v1  ;;  %66 = vmatpush.bf16.msra.mxu0 %v182_v0  ;;  %v180_v3 = vld [vmem:[%s272_s0] sm:$0xff] }
   0x3   :  { %v184_v8 = vld [vmem:[%s274_s3] sm:$0xff]  }
   0x4   :  { %v189_v9 = vld [vmem:[%s273_s2] ss:$0 sm:$0xff]  ;;  %v185_v12 = vunpack.c.l.bf16 %v184_v8  ;;  %v186_v17 = vunpack.c.h.bf16 %v184_v8 }
   0x5   :  { %v190_v53 = vld [vmem:[%s275_s4] ss:$0 sm:$0xff] }
   0x6   :  { %67 = vmatpush.bf16.msra.mxu0 %v181_v2  ;;  %v191_v56 = vld [vmem:[%s276_s5] ss:$0 sm:$0xff] }
   0x7   :  { %v193_v23 = vpop.eup %192 }
   0x8   :  { %v31_v4 = vld [vmem:[#allocation2] sm:$0xff]  ;;  %v102_v24 = vmul.f32 32.0, %v193_v23  ;;  %vm106_vm1 = vweird.f32 %v193_v23 }
   0x9   :  { %179 = vmatmul.msk.bf16.vlgmr.msra.gmra.mxu0 %vm28_vm0, %v180_v3  ;;  %v32_v7 = vld [vmem:[#allocation2 + $0x8] sm:$0xff] }
   0xa   :  { %v103_v25 = vsub.f32 1.0, %v102_v24 }
   0xc   :  { %v104_v26 = vmul.f32 %v193_v23, %v103_v25 }
   0xe   :  { %v105_v27 = vadd.f32 %v193_v23, %v104_v26 }
  0x10   :  { %v107_v28 = vsel %vm106_vm1, %v193_v23, %v105_v27 }
  0x86   :  { %v69_v5 = vpop.f32.mrf.mxu0 }
  0x87   :  { %v74_v6 = vadd.f32 %v69_v5, %v31_v4 }
  0x89   :  { %76 = vst.msk [vmem:[#allocation2] sm:$0xff] %vm28_vm0, %v74_v6 }
  0x8e   :  { %v71_v10 = vpop.f32.mrf.mxu0 }
  0x8f   :  { %v75_v11 = vadd.f32 %v71_v10, %v32_v7 }
  0x90   :  { %v81_v13 = vld [vmem:[#allocation2] sm:$0xff] }
  0x91   :  { %77 = vst.msk [vmem:[#allocation2 + $0x8] sm:$0xff] %vm28_vm0, %v75_v11  ;;  %v87_v14 = vadd.f32 %v189_v9, %v81_v13 }
  0x93   :  { %v93_v15 = vadd.f32 %v185_v12, %v87_v14 }
  0x95   :  { %v95_v16 = vsel %vm28_vm0, %v93_v15, 0.0 }
  0x96   :  { %96 = vadd.xlane.f32.xlu0 %v95_v16 }
  0x98   :  { %v82_v18 = vld [vmem:[#allocation2 + $0x8] sm:$0xff] }
  0x99   :  { %v88_v19 = vadd.f32 %v189_v9, %v82_v18 }
  0x9b   :  { %v94_v20 = vadd.f32 %v186_v17, %v88_v19 }
  0x9d   :  { %v98_v21 = vsel %vm28_vm0, %v94_v20, 0.0 }
  0x9e   :  { %99 = vadd.xlane.f32.xlu0 %v98_v21 }
 0x109   :  { %v97_v29 = vpop.xlane.xlu0 %96 }
 0x10a   :  { %v108_v30 = vmul.f32 %v107_v28, %v97_v29 }
 0x10c   :  { %v110_v31 = vsub.f32 %v93_v15, %v108_v30 }
 0x10e   :  { %v112_v32 = vmul.f32 %v110_v31, %v110_v31 }
 0x110   :  { %v114_v33 = vsel %vm28_vm0, %v112_v32, 0.0 }
 0x111   :  { %115 = vadd.xlane.f32.xlu1 %v114_v33  ;;  %v100_v34 = vpop.xlane.xlu0 %99 }
 0x112   :  { %v109_v35 = vmul.f32 %v107_v28, %v100_v34 }
 0x114   :  { %v111_v36 = vsub.f32 %v94_v20, %v109_v35 }
 0x116   :  { %v113_v37 = vmul.f32 %v111_v36, %v111_v36 }
 0x118   :  { %v117_v38 = vsel %vm28_vm0, %v113_v37, 0.0 }
 0x119   :  { %118 = vadd.xlane.f32.xlu1 %v117_v38 }
 0x184   :  { %v116_v39 = vpop.xlane.xlu1 %115 }
 0x185   :  { %v120_v40 = vmul.f32 %v116_v39, %v107_v28 }
 0x187   :  { %v122_v41 = vadd.f32 1e-05, %v120_v40 }
 0x189   :  { %194 = vrsqrt.f32 %v122_v41  ;;  %vm130_vm3 = vweird.f32 %v122_v41 }
 0x18c   :  { %v119_v42 = vpop.xlane.xlu1 %118 }
 0x18d   :  { %v121_v43 = vmul.f32 %v119_v42, %v107_v28 }
 0x18f   :  { %v195_v44 = vpop.eup %194  ;;  %v123_v45 = vadd.f32 1e-05, %v121_v43 }
 0x190   :  { %v125_v46 = vmul.f32 %v195_v44, %v122_v41  ;;  %vm131_vm2 = vweird.f32 %v195_v44 }
 0x191   :  { %196 = vrsqrt.f32 %v123_v45  ;;  %vm132_vm4 = vmor %vm130_vm3, %vm131_vm2  ;;  %vm140_vm7 = vweird.f32 %v123_v45 }
 0x192   :  { %v126_v47 = vmul.f32 %v195_v44, %v125_v46 }
 0x194   :  { %v127_v48 = vmul.f32 0.5, %v126_v47 }
 0x196   :  { %v128_v49 = vsub.f32 1.5, %v127_v48 }
 0x197   :  { %v197_v50 = vpop.eup %196 }
 0x198   :  { %v129_v51 = vmul.f32 %v195_v44, %v128_v49  ;;  %v135_v52 = vmul.f32 %v197_v50, %v123_v45  ;;  %vm141_vm5 = vweird.f32 %v197_v50 }
 0x199   :  { %vm142_vm8 = vmor %vm140_vm7, %vm141_vm5 }
 0x19a   :  { %v133_v54 = vsel %vm132_vm4, %v195_v44, %v129_v51  ;;  %v136_v55 = vmul.f32 %v197_v50, %v135_v52 }
 0x19b   :  { %v144_v57 = vmul.f32 %v133_v54, %v110_v31 }
 0x19c   :  { %v137_v58 = vmul.f32 0.5, %v136_v55 }
 0x19d   :  { %v150_v59 = vmul.f32 %v190_v53, %v144_v57 }
 0x19e   :  { %v138_v60 = vsub.f32 1.5, %v137_v58 }
 0x19f   :  { %v156_v61 = vadd.f32 %v191_v56, %v150_v59 }
 0x1a0   :  { %v139_v62 = vmul.f32 %v197_v50, %v138_v60 }
 0x1a1   :  { %v158_v63 = vpack.c.bf16 %v156_v61, %v156_v61 }
 0x1a2   :  { %v143_v0 = vsel %vm142_vm8, %v197_v50, %v139_v62 }
 0x1a3   :  { %161 = vst.msk [vmem:[%s277_s6] sm:$0xf] %vm160_vm6, %v158_v63  ;;  %v145_v1 = vmul.f32 %v143_v0, %v111_v36 }
 0x1a5   :  { %v151_v2 = vmul.f32 %v190_v53, %v145_v1 }
 0x1a7   :  { %v157_v3 = vadd.f32 %v191_v56, %v151_v2 }
 0x1a9   :  { %v159_v4 = vpack.c.bf16 %v157_v3, %v157_v3 }
 0x1ab   :  { %162 = vst.msk [vmem:[%s277_s6 + $0x4] sm:$0xf] %vm160_vm6, %v159_v4 }

// kernel: transformer_forward.30
= control target key start
LH: loop header
LB: loop body
LE: loop exit
PB: predicated region body
PF: predicated region fallthrough
CT: control target
= control target key end

     0   :  { %vm19_vm0 = vcmask 523264   ;;  %v108_v1 = vmov 0.0   ;;  %vm47_vm1 = vcmask 261120   ;;  %vm83_vm2 = vcmask 519168   ;;  %s151_s1 = inlined_call_operand.vmem [shape: bf16[32,64], index: 1, kind: input, shape index: {}]   ;;  %s152_s2 = inlined_call_operand.vmem [shape: f32[1,64], index: 2, kind: input, shape index: {}]   ;;  %s153_s0 = inlined_call_operand.vmem [shape: bf16[16,32], index: 0, kind: input, shape index: {}]   ;;  %s154_s3 = inlined_call_operand.vmem [shape: bf16[16,64], index: 3, kind: output, shape index: {}]  }
   0x1   :  { %v105_v0 = vld [vmem:[%s151_s1 + $0x8] sm:$0xff]  ;;  %20 = vst.msk [vmem:[#allocation2] sm:$0xff] %vm19_vm0, %v108_v1  ;;  %v104_v2 = vld [vmem:[%s151_s1] sm:$0xff] }
   0x2   :  { %21 = vst.msk [vmem:[#allocation2 + $0x8] sm:$0xff] %vm19_vm0, %v108_v1  ;;  %57 = vmatpush.bf16.msra.mxu0 %v105_v0  ;;  %v103_v3 = vld [vmem:[%s153_s0] sm:$0xff] }
   0x3   :  { %v107_v8 = vld [vmem:[%s152_s2] ss:$0 sm:$0xff] }
   0x6   :  { %58 = vmatpush.bf16.msra.mxu0 %v104_v2 }
   0x8   :  { %v22_v4 = vld [vmem:[#allocation2] sm:$0xff] }
   0x9   :  { %102 = vmatmul.msk.bf16.vlgmr.msra.gmra.mxu0 %vm47_vm1, %v103_v3  ;;  %v23_v7 = vld [vmem:[#allocation2 + $0x8] sm:$0xff] }
  0x86   :  { %v60_v5 = vpop.f32.mrf.mxu0 }
  0x87   :  { %v65_v6 = vadd.f32 %v60_v5, %v22_v4 }
  0x89   :  { %68 = vst.msk [vmem:[#allocation2] sm:$0xff] %vm19_vm0, %v65_v6 }
  0x8e   :  { %v62_v9 = vpop.f32.mrf.mxu0 }
  0x8f   :  { %v66_v10 = vadd.f32 %v62_v9, %v23_v7 }
  0x90   :  { %v73_v11 = vld [vmem:[#allocation2] sm:$0xff] }
  0x91   :  { %v79_v12 = vadd.f32 %v107_v8, %v73_v11  ;;  %69 = vst.msk [vmem:[#allocation2 + $0x8] sm:$0xff] %vm19_vm0, %v66_v10 }
  0x93   :  { %v81_v13 = vpack.c.bf16 %v79_v12, %v79_v12 }
  0x95   :  { %84 = vst.msk [vmem:[%s154_s3] sm:$0xf] %vm83_vm2, %v81_v13 }
  0x98   :  { %v74_v14 = vld [vmem:[#allocation2 + $0x8] sm:$0xff] }
  0x99   :  { %v80_v15 = vadd.f32 %v107_v8, %v74_v14 }
  0x9b   :  { %v82_v16 = vpack.c.bf16 %v80_v15, %v80_v15 }
  0x9d   :  { %85 = vst.msk [vmem:[%s154_s3 + $0x4] sm:$0xf] %vm83_vm2, %v82_v16 }

// kernel: transformer_forward.29
= control target key start
LH: loop header
LB: loop body
LE: loop exit
PB: predicated region body
PF: predicated region fallthrough
CT: control target
= control target key end

     0   :  { %vm19_vm0 = vcmask 261120   ;;  %v107_v1 = vmov 0.0   ;;  %vm82_vm1 = vcmask 257024   ;;  %s151_s1 = inlined_call_operand.vmem [shape: bf16[32,32], index: 1, kind: input, shape index: {}]   ;;  %s152_s2 = inlined_call_operand.vmem [shape: f32[1,32], index: 2, kind: input, shape index: {}]   ;;  %s153_s0 = inlined_call_operand.vmem [shape: bf16[16,32], index: 0, kind: input, shape index: {}]   ;;  %s154_s3 = inlined_call_operand.vmem [shape: bf16[16,32], index: 3, kind: output, shape index: {}]  }
   0x1   :  { %v104_v0 = vld [vmem:[%s151_s1 + $0x8] sm:$0xff]  ;;  %20 = vst.msk [vmem:[#allocation2] sm:$0xff] %vm19_vm0, %v107_v1  ;;  %v103_v2 = vld [vmem:[%s151_s1] sm:$0xff] }
   0x2   :  { %21 = vst.msk [vmem:[#allocation2 + $0x8] sm:$0xff] %vm19_vm0, %v107_v1  ;;  %57 = vmatpush.bf16.msra.mxu0 %v104_v0  ;;  %v102_v3 = vld [vmem:[%s153_s0] sm:$0xff] }
   0x3   :  { %v106_v8 = vld [vmem:[%s152_s2] ss:$0 sm:$0xff] }
   0x6   :  { %58 = vmatpush.bf16.msra.mxu0 %v103_v2 }
   0x8   :  { %v22_v4 = vld [vmem:[#allocation2] sm:$0xff] }
   0x9   :  { %101 = vmatmul.msk.bf16.vlgmr.msra.gmra.mxu0 %vm19_vm0, %v102_v3  ;;  %v23_v7 = vld [vmem:[#allocation2 + $0x8] sm:$0xff] }
  0x86   :  { %v60_v5 = vpop.f32.mrf.mxu0 }
  0x87   :  { %v65_v6 = vadd.f32 %v60_v5, %v22_v4 }
  0x89   :  { %67 = vst.msk [vmem:[#allocation2] sm:$0xff] %vm19_vm0, %v65_v6 }
  0x8e   :  { %v62_v9 = vpop.f32.mrf.mxu0 }
  0x8f   :  { %v66_v10 = vadd.f32 %v62_v9, %v23_v7 }
  0x90   :  { %v72_v11 = vld [vmem:[#allocation2] sm:$0xff] }
  0x91   :  { %v78_v12 = vadd.f32 %v106_v8, %v72_v11  ;;  %68 = vst.msk [vmem:[#allocation2 + $0x8] sm:$0xff] %vm19_vm0, %v66_v10 }
  0x93   :  { %v80_v13 = vpack.c.bf16 %v78_v12, %v78_v12 }
  0x95   :  { %83 = vst.msk [vmem:[%s154_s3] sm:$0xf] %vm82_vm1, %v80_v13 }
  0x98   :  { %v73_v14 = vld [vmem:[#allocation2 + $0x8] sm:$0xff] }
  0x99   :  { %v79_v15 = vadd.f32 %v106_v8, %v73_v14 }
  0x9b   :  { %v81_v16 = vpack.c.bf16 %v79_v15, %v79_v15 }
  0x9d   :  { %84 = vst.msk [vmem:[%s154_s3 + $0x4] sm:$0xf] %vm82_vm1, %v81_v16 }

// kernel: transformer_forward.31
= control target key start
LH: loop header
LB: loop body
LE: loop exit
PB: predicated region body
PF: predicated region fallthrough
CT: control target
= control target key end

     0   :  { %s903_s21 = smov 0   ;;  %s905_s22 = smov 0   ;;  %s994_s0 = inlined_call_operand.vmem [shape: bf16[2,8,32], index: 0, kind: input, shape index: {}]   ;;  %s995_s1 = inlined_call_operand.vmem [shape: bf16[2,8,64], index: 1, kind: input, shape index: {}]   ;;  %s996_s2 = inlined_call_operand.vmem [shape: f32[8,32], index: 2, kind: input, shape index: {}, may-alias: {2,4}]   ;;  %s997_s3 = inlined_call_operand.vmem [shape: f32[8,32], index: 3, kind: input, shape index: {}, may-alias: {3,5}]   ;;  %s998_s4 = inlined_call_operand.vmem [shape: f32[8,32], index: 4, kind: input, shape index: {}, may-alias: {2,4}]   ;;  %s999_s5 = inlined_call_operand.vmem [shape: f32[8,32], index: 5, kind: input, shape index: {}, may-alias: {3,5}]   ;;  %s1000_s6 = inlined_call_operand.vmem [shape: bf16[2,8,32], index: 6, kind: output, shape index: {}]  }
   0x1   :  { %s907_s23 = smov 0  }
   0x2 LB: > { %s28_s24 = sadd.s32 1, %s850_s22  ;;  %p766_p0 = scmp.ge.s32.totalorder %s854_s23, 1  ;;  %s854_s23 = sphi %s907_s23, %s16_s23   ;;  %s850_s22 = sphi %s905_s22, %s1002_s22   ;;  %s846_s21 = sphi %s903_s21, %s1001_s21  }
   0x3   : > { %p30_p1 = scmp.ge.s32.totalorder %s28_s24, 2  ;;  %p257_p2 = scmp.lt.s32.totalorder %s854_s23, 3 }
   0x5   : > { %s1004_s24 = smov (%p30_p1, %s28_s24), 0  ;;  %p258_p3 = pnand %p766_p0, %p257_p2 }
   0x6   : > { %p303_p4 = scmp.lt.s32.totalorder (!%p258_p3), %s846_s21, 1  ;;  %s856_s8 = smov (!%p258_p3), 124  }
   0x7   : > { %261 = sbr.rel (%p258_p3) target bundleno = 1206 (0x4b6), region = 44  ;;  %s857_s9 = smov (!%p258_p3), 4  }
   0x8   : > { %s858_s18 = smov (!%p258_p3), 120   ;;  %s859_s19 = smov (!%p258_p3), 96  }
   0x9   : > { %s860_s20 = smov (!%p258_p3), 112   ;;  %s863_s29 = smov (!%p258_p3), 80  }
   0xa   : > { %s864_s30 = smov (!%p258_p3), 72  }
   0xc   : > { %s1006_s21 = smov (!%p303_p4, %s846_s21), 1  ;;  %vm345_vm0 = vcmask 31744   ;;  %vm347_vm1 = vcmask 64512   ;;  %vm349_vm2 = vcmask 97280   ;;  %vm351_vm3 = vcmask 130048   ;;  %v362_v16 = vld [vmem:[%s998_s4] sm:$0xff] }
   0xd   : > { %s921_s25 = sshll.u32 %s1006_s21, 2  ;;  %vm353_vm4 = vcmask 162816   ;;  %vm355_vm5 = vcmask 195584   ;;  %v333_v17 = vld [vmem:[%s996_s2] sm:$0xff]  ;;  %vm357_vm6 = vcmask 228352   ;;  %vm425_vm7 = vcmask 1043456  }
   0xe   : > { %s313_s28 = scalar_lea.vmem %s995_s1, %s921_s25  ;;  %s309_s7 = scalar_lea.vmem %s994_s0, %s921_s25  ;;  %v334_v21 = vld [vmem:[%s997_s3] sm:$0xff]  ;;  %vm443_vm8 = vcmask 60416   ;;  %vm513_vm9 = vcmask 126016   ;;  %vm577_vm10 = vcmask 191616   ;;  %vm641_vm11 = vcmask 257216  }
   0xf   : > { %v330_v0 = vld [vmem:[%s313_s28] sm:$0xf]  ;;  %s861_s21 = smov 104   ;;  %s966_s28 = scalar_lea.vmem %s1000_s6, %s921_s25 }
  0x10   : > { %v331_v1 = vld [vmem:[%s309_s7] sm:$0xf]  ;;  %v361_v2 = vunpack.c.l.bf16 %v330_v0  ;;  %v418_v39 = vunpack.c.l.b16 %v330_v0  ;;  %s862_s25 = smov 88   ;;  %s865_s7 = smov 8  }
  0x11   : > { %v332_v3 = vunpack.c.l.bf16 %v331_v1  ;;  %v363_v23 = vld [vmem:[%s999_s5] sm:$0xff] }
  0x12   : > { %v364_v4 = vsub.f32 0.0, %v361_v2  ;;  %v365_v25 = vmul.f32 %v362_v16, %v361_v2  ;;  %v947_v40 = vpack.c.b16 %v418_v39, %v418_v39 }
  0x13   : > { %v335_v5 = vsub.f32 0.0, %v332_v3  ;;  %v336_v27 = vmul.f32 %v333_v17, %v332_v3 }
  0x14   : > { %367 = vrot.lane.b32.xlu0 %v364_v4, %s856_s8 }
  0x15   : > { %338 = vrot.lane.b32.xlu1 %v335_v5, %s856_s8  ;;  %s866_s8 = smov 16  }
  0x1c   : > { %371 = vrot.lane.b32.xlu0 %v361_v2, %s857_s9 }
  0x1d   : > { %342 = vrot.lane.b32.xlu1 %v332_v3, %s857_s9  ;;  %s867_s9 = smov 24  }
  0x86   : > { %v368_v6 = vpop.permute.xlu0 %367 }
  0x87   : > { %v339_v7 = vpop.permute.xlu1 %338 }
  0x8e   : > { %v372_v8 = vpop.permute.xlu0 %371 }
  0x8f   : > { %v343_v9 = vpop.permute.xlu1 %342  ;;  %v374_v10 = vsel %vm345_vm0, %v368_v6, %v372_v8 }
  0x90   : > { %v346_v11 = vsel %vm345_vm0, %v339_v7, %v343_v9  ;;  %v375_v12 = vsel %vm347_vm1, %v374_v10, %v368_v6 }
  0x91   : > { %v348_v13 = vsel %vm347_vm1, %v346_v11, %v339_v7  ;;  %v376_v14 = vsel %vm349_vm2, %v375_v12, %v372_v8 }
  0x92   : > { %v350_v15 = vsel %vm349_vm2, %v348_v13, %v343_v9  ;;  %v377_v18 = vsel %vm351_vm3, %v376_v14, %v368_v6 }
  0x93   : > { %v352_v19 = vsel %vm351_vm3, %v350_v15, %v339_v7  ;;  %v378_v20 = vsel %vm353_vm4, %v377_v18, %v372_v8 }
  0x94   : > { %v354_v22 = vsel %vm353_vm4, %v352_v19, %v343_v9  ;;  %v379_v26 = vsel %vm355_vm5, %v378_v20, %v368_v6 }
  0x95   : > { %v356_v24 = vsel %vm355_vm5, %v354_v22, %v339_v7  ;;  %v380_v29 = vsel %vm357_vm6, %v379_v26, %v372_v8 }
  0x96   : > { %v358_v28 = vsel %vm357_vm6, %v356_v24, %v343_v9  ;;  %v381_v31 = vmul.f32 %v380_v29, %v363_v23 }
  0x97   : > { %v359_v30 = vmul.f32 %v358_v28, %v334_v21 }
  0x98   : > { %v382_v32 = vadd.f32 %v381_v31, %v365_v25 }
  0x99   : > { %v360_v33 = vadd.f32 %v359_v30, %v336_v27 }
  0x9a   : > { %v384_v34 = vpack.c.bf16 %v382_v32, %v382_v32 }
  0x9b   : > { %v383_v35 = vpack.c.bf16 %v360_v33, %v360_v33 }
  0x9c   : > { %v389_v36 = vsel %vm347_vm1, %v384_v34, 0  ;;  %v451_v41 = vunpack.c.l.b16 %v384_v34 }
  0x9d   : > { %v446_v37 = vunpack.c.l.b16 %v383_v35  ;;  %398 = vmatpush.bf16.xpose.msra.mxu0 %v389_v36 }
  0x9e   : > { %v452_v42 = vpack.c.b16 %v451_v41, %v451_v41 }
  0x9f   : > { %v447_v38 = vpack.c.b16 %v446_v37, %v446_v37 }
  0xa1   : > { %448 = vrot.lane.b32.xlu1 %v447_v38, %s858_s18 }
  0xa4   : > { %770 = vmatmul.msk.bf16.vlgmr.msra.gmra.mxu0 %vm347_vm1, %v383_v35 }
  0xa9   : > { %420 = vrot.lane.b32.xlu1 %v947_v40, %s859_s19 }
  0xb1   : > { %517 = vrot.lane.b32.xlu1 %v452_v42, %s860_s20 }
  0xb9   : > { %515 = vrot.lane.b32.xlu1 %v447_v38, %s860_s20 }
 0x113   : > { %v449_v43 = vpop.permute.xlu1 %448 }
 0x11b   : > { %v421_v44 = vpop.permute.xlu1 %420 }
 0x11c   : > { %v427_v45 = vsel %vm425_vm7, %v421_v44, 0 }
 0x11d   : > { %436 = vmatpush.bf16.msra.mxu1 %v427_v45 }
 0x121   : > { %v400_v46 = vpop.f32.mrf.mxu0 }
 0x122   : > { %v404_v47 = vmul.f32 0.35355338, %v400_v46 }
 0x123   : > { %v518_v48 = vpop.permute.xlu1 %517 }
 0x124   : > { %v523_v49 = vsel %vm347_vm1, %v518_v48, 0  ;;  %v405_v50 = vsel %vm347_vm1, %v404_v47, -inf }
 0x125   : > { %532 = vmatpush.bf16.xpose.msrb.mxu1 %v523_v49  ;;  %406 = vmax.xlane.f32.xlu2 %v405_v50 }
 0x129   : > { %v402_v51 = vpop.f32.mrf.mxu0 }
 0x12b   : > { %v516_v8 = vpop.permute.xlu1 %515 }
 0x13d   : > { %453 = vrot.lane.b32.xlu2 %v452_v42, %s858_s18 }
 0x145   : > { %581 = vrot.lane.b32.xlu2 %v452_v42, %s861_s21 }
 0x14d   : > { %579 = vrot.lane.b32.xlu2 %v447_v38, %s861_s21 }
 0x198   : > { %v407_v52 = vpop.xlane.xlu2 %406 }
 0x199   : > { %v408_v53 = vsub.f32 %v404_v47, %v407_v52 }
 0x19b   : > { %v409_v54 = vmul.f32 1.442695, %v408_v53 }
 0x19d   : > { %816 = vpow2.f32 %v409_v54 }
 0x1a0   : > { %v454_v55 = vpop.permute.xlu2 %453 }
 0x1a1   : > { %v459_v56 = vsel %vm347_vm1, %v454_v55, 0 }
 0x1a2   : > { %468 = vmatpush.bf16.xpose.msra.mxu2 %v459_v56 }
 0x1a3   : > { %v817_v57 = vpop.eup %816 }
 0x1a4   : > { %v411_v58 = vsel %vm347_vm1, %v817_v57, 0.0 }
 0x1a5   : > { %412 = vadd.xlane.f32.xlu0 %v411_v58 }
 0x1a8   : > { %v582_v59 = vpop.permute.xlu2 %581 }
 0x1a9   : > { %772 = vmatmul.msk.bf16.vlgmr.msra.gmra.mxu2 %vm347_vm1, %v449_v43  ;;  %v587_v60 = vsel %vm347_vm1, %v582_v59, 0 }
 0x1aa   : > { %596 = vmatpush.bf16.xpose.msrb.mxu0 %v587_v60 }
 0x1b0   : > { %v580_v61 = vpop.permute.xlu2 %579 }
 0x1b1   : > { %776 = vmatmul.msk.bf16.vlgmr.msrb.gmra.mxu0 %vm347_vm1, %v580_v61 }
 0x218   : > { %v413_v62 = vpop.xlane.xlu0 %412 }
 0x219   : > { %818 = vrcp.f32 %v413_v62 }
 0x21f   : > { %v819_v63 = vpop.eup %818 }
 0x220   : > { %v415_v0 = vmul.f32 %v819_v63, %v817_v57 }
 0x222   : > { %v416_v1 = vpack.c.bf16 %v415_v0, %v415_v0 }
 0x224   : > { %771 = vmatmul.msk.bf16.vlgmr.msra.gmra.mxu1 %vm347_vm1, %v416_v1 }
 0x22c   : > { %v470_v2 = vpop.f32.mrf.mxu2 }
 0x22d   : > { %v474_v3 = vmul.f32 0.35355338, %v470_v2 }
 0x22e   : > { %v598_v4 = vpop.f32.mrf.mxu0 }
 0x22f   : > { %v602_v5 = vmul.f32 0.35355338, %v598_v4  ;;  %v475_v6 = vsel %vm347_vm1, %v474_v3, -inf }
 0x230   : > { %476 = vmax.xlane.f32.xlu1 %v475_v6 }
 0x231   : > { %v603_v7 = vsel %vm347_vm1, %v602_v5, -inf }
 0x232   : > { %604 = vmax.xlane.f32.xlu0 %v603_v7 }
 0x234   : > { %v472_v9 = vpop.f32.mrf.mxu2  ;;  %774 = vmatmul.msk.bf16.vlgmr.msrb.gmra.mxu1 %vm347_vm1, %v516_v8 }
 0x236   : > { %v600_v10 = vpop.f32.mrf.mxu0 }
 0x2a1   : > { %v438_v11 = vpop.f32.mrf.mxu1 }
 0x2a2   : > { %v442_v12 = vpack.c.bf16 %v438_v11, %v438_v11 }
 0x2a3   : > { %v477_v13 = vpop.xlane.xlu1 %476 }
 0x2a4   : > { %444 = vst.msk [vmem:[%s966_s28] sm:$0xf] %vm443_vm8, %v442_v12  ;;  %v478_v14 = vsub.f32 %v474_v3, %v477_v13 }
 0x2a5   : > { %v605_v15 = vpop.xlane.xlu0 %604 }
 0x2a6   : > { %v479_v16 = vmul.f32 1.442695, %v478_v14  ;;  %v606_v17 = vsub.f32 %v602_v5, %v605_v15 }
 0x2a8   : > { %820 = vpow2.f32 %v479_v16  ;;  %v607_v18 = vmul.f32 1.442695, %v606_v17 }
 0x2a9   : > { %v440_v19 = vpop.f32.mrf.mxu1 }
 0x2aa   : > { %822 = vpow2.f32 %v607_v18 }
 0x2ae   : > { %v821_v20 = vpop.eup %820 }
 0x2af   : > { %v481_v21 = vsel %vm347_vm1, %v821_v20, 0.0 }
 0x2b0   : > { %v823_v22 = vpop.eup %822  ;;  %482 = vadd.xlane.f32.xlu0 %v481_v21 }
 0x2b1   : > { %v534_v23 = vpop.f32.mrf.mxu1  ;;  %v609_v24 = vsel %vm347_vm1, %v823_v22, 0.0 }
 0x2b2   : > { %v538_v25 = vmul.f32 0.35355338, %v534_v23  ;;  %610 = vadd.xlane.f32.xlu1 %v609_v24 }
 0x2b4   : > { %v539_v26 = vsel %vm347_vm1, %v538_v25, -inf }
 0x2b5   : > { %540 = vmax.xlane.f32.xlu2 %v539_v26 }
 0x2b9   : > { %v536_v27 = vpop.f32.mrf.mxu1 }
 0x2c4   : > { %487 = vrot.lane.b32.xlu0 %v947_v40, %s862_s25 }
 0x2cc   : > { %551 = vrot.lane.b32.xlu0 %v947_v40, %s863_s29 }
 0x323   : > { %v483_v29 = vpop.xlane.xlu0 %482 }
 0x324   : > { %824 = vrcp.f32 %v483_v29 }
 0x325   : > { %v611_v42 = vpop.xlane.xlu1 %610 }
 0x328   : > { %v541_v28 = vpop.xlane.xlu2 %540 }
 0x329   : > { %v542_v30 = vsub.f32 %v538_v25, %v541_v28 }
 0x32a   : > { %v825_v32 = vpop.eup %824 }
 0x32b   : > { %v543_v31 = vmul.f32 1.442695, %v542_v30  ;;  %v485_v35 = vmul.f32 %v825_v32, %v821_v20 }
 0x32d   : > { %826 = vpow2.f32 %v543_v31  ;;  %v486_v38 = vpack.c.bf16 %v485_v35, %v485_v35 }
 0x32e   : > { %828 = vrcp.f32 %v611_v42 }
 0x333   : > { %v827_v33 = vpop.eup %826 }
 0x334   : > { %v545_v34 = vsel %vm347_vm1, %v827_v33, 0.0  ;;  %v829_v44 = vpop.eup %828 }
 0x335   : > { %546 = vadd.xlane.f32.xlu2 %v545_v34  ;;  %v613_v46 = vmul.f32 %v829_v44, %v823_v22 }
 0x336   : > { %v488_v36 = vpop.permute.xlu0 %487 }
 0x337   : > { %v493_v37 = vsel %vm425_vm7, %v488_v36, 0  ;;  %v614_v51 = vpack.c.bf16 %v613_v46, %v613_v46 }
 0x338   : > { %502 = vmatpush.bf16.msra.mxu3 %v493_v37 }
 0x33b   : > { %773 = vmatmul.msk.bf16.vlgmr.msra.gmra.mxu3 %vm347_vm1, %v486_v38 }
 0x33e   : > { %v552_v39 = vpop.permute.xlu0 %551 }
 0x33f   : > { %v557_v41 = vsel %vm425_vm7, %v552_v39, 0 }
 0x340   : > { %566 = vmatpush.bf16.msrb.mxu3 %v557_v41 }
 0x34d   : > { %615 = vrot.lane.b32.xlu2 %v947_v40, %s864_s30 }
 0x3a8   : > { %v547_v43 = vpop.xlane.xlu2 %546 }
 0x3a9   : > { %830 = vrcp.f32 %v547_v43 }
 0x3af   : > { %v831_v45 = vpop.eup %830 }
 0x3b0   : > { %v549_v47 = vmul.f32 %v831_v45, %v827_v33  ;;  %v616_v48 = vpop.permute.xlu2 %615 }
 0x3b1   : > { %v621_v49 = vsel %vm425_vm7, %v616_v48, 0 }
 0x3b2   : > { %630 = vmatpush.bf16.msrb.mxu2 %v621_v49  ;;  %v550_v50 = vpack.c.bf16 %v549_v47, %v549_v47 }
 0x3b4   : > { %775 = vmatmul.msk.bf16.vlgmr.msrb.gmra.mxu3 %vm347_vm1, %v550_v50 }
 0x3b5   : > { %777 = vmatmul.msk.bf16.vlgmr.msrb.gmra.mxu2 %vm347_vm1, %v614_v51 }
 0x3be   : > { %v504_v40 = vpop.f32.mrf.mxu3 }
 0x3bf   : > { %v508_v52 = vpack.c.bf16 %v504_v40, %v504_v40 }
 0x3c1   : > { %510 = vrot.lane.b32.xlu1 %v508_v52, %s865_s7 }
 0x3c6   : > { %v506_v53 = vpop.f32.mrf.mxu3 }
 0x433   : > { %v511_v54 = vpop.permute.xlu1 %510 }
 0x434   : > { %514 = vst.msk [vmem:[%s966_s28] sm:$0xf] %vm513_vm9, %v511_v54 }
 0x437   : > { %v568_v55 = vpop.f32.mrf.mxu3 }
 0x438   : > { %v572_v56 = vpack.c.bf16 %v568_v55, %v568_v55  ;;  %v632_v57 = vpop.f32.mrf.mxu2 }
 0x439   : > { %v636_v59 = vpack.c.bf16 %v632_v57, %v632_v57 }
 0x43a   : > { %574 = vrot.lane.b32.xlu0 %v572_v56, %s866_s8 }
 0x43f   : > { %v570_v58 = vpop.f32.mrf.mxu3 }
 0x440   : > { %v634_v60 = vpop.f32.mrf.mxu2 }
 0x442   : > { %638 = vrot.lane.b32.xlu0 %v636_v59, %s867_s9 }
 0x4ac   : > { %v575_v61 = vpop.permute.xlu0 %574 }
 0x4ad   : > { %578 = vst.msk [vmem:[%s966_s28] sm:$0xf] %vm577_vm10, %v575_v61 }
 0x4b4   : > { %v639_v62 = vpop.permute.xlu0 %638 }
 0x4b5   : > { %642 = vst.msk [vmem:[%s966_s28] sm:$0xf] %vm641_vm11, %v639_v62 }
 0x4b6 PF: > { %s16_s23 = sadd.s32 1, %s854_s23   ;;  %s1001_s21 = smov %s850_s22 }
 0x4b7   : > { %p13_p5 = scmp.ge.s32.totalorder %s16_s23, 4   ;;  %s1002_s22 = smov %s1004_s24 }
 0x4b9   :  { %15 = sbr.rel (!%p13_p5) target bundleno = 2 (0x2), region = 83 }

// kernel: transformer_forward.57
= control target key start
LH: loop header
LB: loop body
LE: loop exit
PB: predicated region body
PF: predicated region fallthrough
CT: control target
= control target key end

     0   :  { %vm20_vm0 = vcmask 523264   ;;  %v149_v1 = vmov 0.0   ;;  %s194_s0 = inlined_call_operand.vmem [shape: bf16[16,32], index: 0, kind: input, shape index: {}]   ;;  %s195_s1 = inlined_call_operand.vmem [shape: bf16[32,64], index: 1, kind: input, shape index: {}]   ;;  %s196_s2 = inlined_call_operand.vmem [shape: f32[1,64], index: 2, kind: input, shape index: {}]   ;;  %s197_s3 = inlined_call_operand.hbm [shape: f32[16,64], index: 3, kind: output, shape index: {}]  }
   0x1   :  { %v117_v0 = vld [vmem:[%s195_s1 + $0x8] sm:$0xff]  ;;  %21 = vst.msk [vmem:[#allocation2] sm:$0xff] %vm20_vm0, %v149_v1 }
   0x2   :  { %8 = vsyncpa [#allocation4], 0  ;;  %58 = vmatpush.bf16.msra.mxu0 %v117_v0  ;;  %v116_v2 = vld [vmem:[%s195_s1] sm:$0xff]  ;;  %22 = vst.msk [vmem:[#allocation2 + $0x8] sm:$0xff] %vm20_vm0, %v149_v1  ;;  %vm48_vm1 = vcmask 261120   ;;  %s90_s22 = sshll.u32 %s197_s3, 4  ;;  %s91_s22 = int_to_ptr.hbm [resolvable:$true] %s90_s22 }
   0x3   :  { %v115_v3 = vld [vmem:[%s194_s0] sm:$0xff]  ;;  %s150_s0 = smov [#allocation3]   ;;  %s152_s23 = smov 8  }
   0x4   :  { %v122_v8 = vld [vmem:[%s196_s2] ss:$0 sm:$0xff]  ;;  %s88_s1 = sshll.u32 %s150_s0, 4  ;;  %s151_s2 = smov 128   ;;  %s89_s1 = int_to_ptr.vmem [resolvable:$true] %s88_s1 }
   0x6   :  { %59 = vmatpush.bf16.msra.mxu0 %v116_v2 }
   0x8   :  { %v23_v4 = vld [vmem:[#allocation2] sm:$0xff] }
   0x9   :  { %114 = vmatmul.msk.bf16.vlgmr.msra.gmra.mxu0 %vm48_vm1, %v115_v3  ;;  %v24_v7 = vld [vmem:[#allocation2 + $0x8] sm:$0xff] }
  0x86   :  { %v61_v5 = vpop.f32.mrf.mxu0 }
  0x87   :  { %v66_v6 = vadd.f32 %v61_v5, %v23_v4 }
  0x89   :  { %69 = vst.msk [vmem:[#allocation2] sm:$0xff] %vm20_vm0, %v66_v6 }
  0x8e   :  { %v63_v9 = vpop.f32.mrf.mxu0 }
  0x8f   :  { %v67_v10 = vadd.f32 %v63_v9, %v24_v7 }
  0x90   :  { %v74_v11 = vld [vmem:[#allocation2] sm:$0xff] }
  0x91   :  { %70 = vst.msk [vmem:[#allocation2 + $0x8] sm:$0xff] %vm20_vm0, %v67_v10  ;;  %v80_v12 = vadd.f32 %v122_v8, %v74_v11 }
  0x93   :  { %82 = vst.msk [vmem:[#allocation3] sm:$0xff] %vm20_vm0, %v80_v12 }
  0x98   :  { %v75_v13 = vld [vmem:[#allocation2 + $0x8] sm:$0xff] }
  0x99   :  { %v81_v14 = vadd.f32 %v122_v8, %v75_v13 }
  0x9b   :  { %83 = vst.msk [vmem:[#allocation3 + $0x8] sm:$0xff] %vm20_vm0, %v81_v14 }
  0x9c   :  { %96 = dma.vmem_to_hbm [thread:$0]  %s89_s1, 256, %s91_s22, [#allocation4], %s151_s2, %s151_s2, %s152_s23  }
  0x9d   :  { %147 = dma.done.wait [#allocation4], 256  }
  0x9e   :  { %148 = vsyncadd [#allocation4], 4294967040 }
  0x9f   :  { %101 = vsyncpa [#allocation4], 1 }

// kernel: transformer_forward.33
= control target key start
LH: loop header
LB: loop body
LE: loop exit
PB: predicated region body
PF: predicated region fallthrough
CT: control target
= control target key end

     0   :  { %s984_s27 = smov 0   ;;  %s986_s28 = smov 0   ;;  %s1079_s0 = inlined_call_operand.vmem [shape: bf16[16,32], index: 0, kind: input, shape index: {}]   ;;  %s1080_s1 = inlined_call_operand.vmem [shape: f32[16,4], index: 1, kind: input, shape index: {}]   ;;  %s1081_s2 = inlined_call_operand.vmem [shape: bf16[4,32,64], index: 2, kind: input, shape index: {}]   ;;  %s1082_s3 = inlined_call_operand.vmem [shape: f32[4,1,64], index: 3, kind: input, shape index: {}]   ;;  %s1083_s4 = inlined_call_operand.vmem [shape: bf16[4,64,32], index: 4, kind: input, shape index: {}]   ;;  %s1084_s5 = inlined_call_operand.vmem [shape: f32[4,1,32], index: 5, kind: input, shape index: {}]   ;;  %s1085_s6 = inlined_call_operand.vmem [shape: f32[1,32], index: 6, kind: input, shape index: {}]   ;;  %s1086_s7 = inlined_call_operand.vmem [shape: f32[1,32], index: 7, kind: input, shape index: {}]   ;;  %s1087_s8 = inlined_call_operand.vmem [shape: bf16[16,32], index: 8, kind: output, shape index: {}]  }
   0x1   :  { %s988_s29 = smov 0  }
   0x2 LB: > { %s33_s30 = sadd.s32 1, %s931_s28  ;;  %p821_p0 = scmp.ge.s32.totalorder %s935_s29, 1  ;;  %s935_s29 = sphi %s988_s29, %s18_s29   ;;  %s931_s28 = sphi %s986_s28, %s1089_s28   ;;  %s927_s27 = sphi %s984_s27, %s1088_s27  }
   0x3   : > { %p35_p1 = scmp.ge.s32.totalorder %s33_s30, 4  ;;  %p346_p2 = scmp.lt.s32.totalorder %s935_s29, 5 }
   0x5   : > { %s1091_s30 = smov (%p35_p1, %s33_s30), 0  ;;  %p347_p3 = pnand %p821_p0, %p346_p2 }
   0x6   : > { %p423_p4 = scmp.lt.s32.totalorder (!%p347_p3), %s927_s27, 3  ;;  %p457_p5 = scmp.eq.s32.totalorder (!%p347_p3), %s927_s27, 0 }
   0x7   : > { %350 = sbr.rel (%p347_p3) target bundleno = 587 (0x24b), region = 52 }
   0xc   : > { %s1007_s9 = scalar_select %p423_p4, %s927_s27, 3  ;;  %vm463_vm0 = vcmask (%p457_p5), 261120   ;;  %v937_v0 = vmov (%p457_p5), 0.0  }
   0xd   : > { %462 = sbr.rel (!%p457_p5) target bundleno = 18 (0x12), region = 56  ;;  %464 = vst.msk [vmem:[#allocation2] sm:$0xff] (%p457_p5), %vm463_vm0, %v937_v0 }
   0xe   : > { %s862_s10 = sshll.u32 %s1007_s9, 4  ;;  %s436_s13 = scalar_lea.vmem %s1082_s3, %s1007_s9  ;;  %465 = vst.msk [vmem:[#allocation2 + $0x8] sm:$0xff] (%p457_p5), %vm463_vm0, %v937_v0 }
   0xf   : > { %s430_s16 = scalar_lea.vmem %s1081_s2, %s862_s10  ;;  %s863_s17 = sshll.u32 %s1007_s9, 5 }
  0x10   : > { %s445_s20 = scalar_lea.vmem %s1083_s4, %s863_s17  ;;  %s449_s23 = scalar_lea.vmem %s1084_s5, %s1007_s9 }
  0x12 PF: > { %v867_v1 = vld [vmem:[%s430_s16 + $0x8] sm:$0xff]  ;;  %v866_v2 = vld [vmem:[%s430_s16] sm:$0xff]  ;;  %vm493_vm1 = vcmask 261120   ;;  %v871_v4 = vld [vmem:[%s445_s20 + $0x18] sm:$0xff]  ;;  %v574_v8 = vlaneseq  ;;  %v576_v9 = vstv %s927_s27  ;;  %vm580_vm2 = vcmask 31744   ;;  %p595_p6 = scmp.eq.s32.totalorder %s927_s27, 3 }
  0x13   : > { %503 = vmatpush.bf16.msra.mxu0 %v867_v1  ;;  %v865_v3 = vld [vmem:[%s1079_s0] sm:$0xff]  ;;  %562 = vmatpush.bf16.msra.mxu1 %v871_v4  ;;  %v870_v5 = vld [vmem:[%s445_s20 + $0x10] sm:$0xff]  ;;  %v869_v6 = vld [vmem:[%s445_s20 + $0x8] sm:$0xff]  ;;  %vm554_vm4 = vcmask 523264   ;;  %v938_v47 = vmov (%p595_p6), 32.0   ;;  %vm673_vm10 = vcmask (%p595_p6), 257024  }
  0x14   : > { %v868_v7 = vld [vmem:[%s445_s20] sm:$0xff]  ;;  %v575_v11 = vand.u32 127, %v574_v8  ;;  %v573_v14 = vld [vmem:[%s1080_s1 + $0x8] sm:$0xff]  ;;  %907 = vrcp.f32 (%p595_p6), %v938_v47 }
  0x15   : > { %v572_v10 = vld [vmem:[%s1080_s1] sm:$0xff]  ;;  %v588_v35 = vld [vmem:[#allocation2 + $0x8] sm:$0xff] }
  0x16   : > { %vm577_vm3 = vcmp.eq.s32.totalorder %v575_v11, %v576_v9  ;;  %v903_v18 = vld [vmem:[%s436_s13] ss:$0 sm:$0xff] }
  0x17   : > { %504 = vmatpush.bf16.msra.mxu0 %v866_v2  ;;  %563 = vmatpush.bf16.msra.mxu1 %v870_v5  ;;  %v578_v12 = vsel %vm577_vm3, %v572_v10, 0.0  ;;  %v579_v15 = vsel %vm577_vm3, %v573_v14, 0.0  ;;  %v904_v25 = vld [vmem:[%s449_s23] ss:$0 sm:$0xff] }
  0x18   : > { %v581_v13 = vsel %vm580_vm2, %v578_v12, 0.0  ;;  %v584_v16 = vsel %vm580_vm2, %v579_v15, 0.0  ;;  %v587_v29 = vld [vmem:[#allocation2] sm:$0xff] }
  0x19   : > { %582 = vadd.xlane.f32.xlu0 %v581_v13  ;;  %v874_v39 = vld [vmem:[%s1079_s0] sm:$0xff] (%p595_p6)  }
  0x1a   : > { %839 = vmatmul.msk.bf16.vlgmr.msra.gmra.mxu0 %vm493_vm1, %v865_v3  ;;  %v875_v40 = vunpack.c.l.bf16 (%p595_p6), %v874_v39  ;;  %v876_v42 = vunpack.c.h.bf16 (%p595_p6), %v874_v39  ;;  %v908_v48 = vpop.eup (%p595_p6), %907  ;;  %v905_v14 = vld [vmem:[%s1085_s6] ss:$0 sm:$0xff] (%p595_p6) }
  0x1b   : > { %564 = vmatpush.bf16.msra.mxu1 %v869_v6  ;;  %v615_v49 = vmul.f32 (%p595_p6), 32.0, %v908_v48  ;;  %vm619_vm5 = vweird.f32 (%p595_p6), %v908_v48 }
  0x1d   : > { %v616_v50 = vsub.f32 (%p595_p6), 1.0, %v615_v49 }
  0x1f   : > { %565 = vmatpush.bf16.msra.mxu1 %v868_v7  ;;  %v617_v51 = vmul.f32 (%p595_p6), %v908_v48, %v616_v50 }
  0x21   : > { %585 = vadd.xlane.f32.xlu0 %v584_v16  ;;  %v618_v52 = vadd.f32 (%p595_p6), %v908_v48, %v617_v51 }
  0x23   : > { %v620_v53 = vsel (%p595_p6), %vm619_vm5, %v908_v48, %v618_v52 }
  0x8c   : > { %v583_v26 = vpop.xlane.xlu0 %582 }
  0x94   : > { %v586_v33 = vpop.xlane.xlu0 %585 }
  0x97   : > { %v506_v17 = vpop.f32.mrf.mxu0 }
  0x98   : > { %v507_v19 = vadd.f32 %v903_v18, %v506_v17  ;;  %v906_v17 = vld [vmem:[%s1086_s7] ss:$0 sm:$0xff] (%p595_p6) }
  0x9a   : > { %v511_v22 = vmax.f32 %v507_v19, 0.0 }
  0x9f   : > { %v508_v20 = vpop.f32.mrf.mxu0 }
  0xa0   : > { %v509_v21 = vadd.f32 %v903_v18, %v508_v20 }
  0xa2   : > { %v512_v23 = vmax.f32 %v509_v21, 0.0 }
  0xa4   : > { %v513_v24 = vpack.c.bf16 %v512_v23, %v511_v22 }
  0xa6   : > { %856 = vmatmul.msk.bf16.vlgmr.msra.gmra.mxu1 %vm554_vm4, %v513_v24 }
 0x123   : > { %v567_v27 = vpop.f32.mrf.mxu1 }
 0x124   : > { %v568_v28 = vadd.f32 %v904_v25, %v567_v27 }
 0x126   : > { %v589_v30 = vmul.f32 %v583_v26, %v568_v28 }
 0x128   : > { %v591_v31 = vadd.f32 %v589_v30, %v587_v29 }
 0x12a   : > { %593 = vst.msk [vmem:[#allocation2] sm:$0xff] %vm493_vm1, %v591_v31 }
 0x12b   : > { %v569_v32 = vpop.f32.mrf.mxu1 }
 0x12c   : > { %v570_v34 = vadd.f32 %v904_v25, %v569_v32 }
 0x12e   : > { %v590_v36 = vmul.f32 %v586_v33, %v570_v34  ;;  %599 = sbr.rel (!%p595_p6) target bundleno = 587 (0x24b), region = 60 }
 0x130   : > { %v592_v37 = vadd.f32 %v590_v36, %v588_v35 }
 0x131   : > { %v600_v38 = vld [vmem:[#allocation2] sm:$0xff] (%p595_p6) }
 0x132   : > { %594 = vst.msk [vmem:[#allocation2 + $0x8] sm:$0xff] %vm493_vm1, %v592_v37  ;;  %v606_v41 = vadd.f32 (%p595_p6), %v875_v40, %v600_v38 }
 0x134   : > { %v608_v44 = vsel %vm493_vm1, %v606_v41, 0.0 }
 0x135   : > { %609 = vadd.xlane.f32.xlu0 %v608_v44 }
 0x139   : > { %v601_v43 = vld [vmem:[#allocation2 + $0x8] sm:$0xff] }
 0x13a   : > { %v607_v45 = vadd.f32 %v876_v42, %v601_v43 }
 0x13c   : > { %v611_v46 = vsel %vm493_vm1, %v607_v45, 0.0 }
 0x13d   : > { %612 = vadd.xlane.f32.xlu0 %v611_v46 }
 0x1a8   : > { %v610_v54 = vpop.xlane.xlu0 %609 }
 0x1a9   : > { %v621_v55 = vmul.f32 %v620_v53, %v610_v54 }
 0x1ab   : > { %v623_v56 = vsub.f32 %v606_v41, %v621_v55 }
 0x1ad   : > { %v625_v57 = vmul.f32 %v623_v56, %v623_v56 }
 0x1af   : > { %v627_v58 = vsel %vm493_vm1, %v625_v57, 0.0 }
 0x1b0   : > { %628 = vadd.xlane.f32.xlu1 %v627_v58  ;;  %v613_v59 = vpop.xlane.xlu0 %612 }
 0x1b1   : > { %v622_v60 = vmul.f32 %v620_v53, %v613_v59 }
 0x1b3   : > { %v624_v61 = vsub.f32 %v607_v45, %v622_v60 }
 0x1b5   : > { %v626_v62 = vmul.f32 %v624_v61, %v624_v61 }
 0x1b7   : > { %v630_v63 = vsel %vm493_vm1, %v626_v62, 0.0 }
 0x1b8   : > { %631 = vadd.xlane.f32.xlu1 %v630_v63 }
 0x223   : > { %v629_v0 = vpop.xlane.xlu1 %628 }
 0x224   : > { %v633_v1 = vmul.f32 %v629_v0, %v620_v53 }
 0x226   : > { %v635_v2 = vadd.f32 1e-05, %v633_v1 }
 0x228   : > { %909 = vrsqrt.f32 %v635_v2  ;;  %vm643_vm7 = vweird.f32 %v635_v2 }
 0x22b   : > { %v632_v3 = vpop.xlane.xlu1 %631 }
 0x22c   : > { %v634_v4 = vmul.f32 %v632_v3, %v620_v53 }
 0x22e   : > { %v910_v5 = vpop.eup %909  ;;  %v636_v6 = vadd.f32 1e-05, %v634_v4 }
 0x22f   : > { %v638_v7 = vmul.f32 %v910_v5, %v635_v2  ;;  %vm644_vm6 = vweird.f32 %v910_v5 }
 0x230   : > { %911 = vrsqrt.f32 %v636_v6  ;;  %vm645_vm8 = vmor %vm643_vm7, %vm644_vm6  ;;  %vm653_vm11 = vweird.f32 %v636_v6 }
 0x231   : > { %v639_v8 = vmul.f32 %v910_v5, %v638_v7 }
 0x233   : > { %v640_v9 = vmul.f32 0.5, %v639_v8 }
 0x235   : > { %v641_v10 = vsub.f32 1.5, %v640_v9 }
 0x236   : > { %v912_v11 = vpop.eup %911 }
 0x237   : > { %v642_v12 = vmul.f32 %v910_v5, %v641_v10  ;;  %v648_v13 = vmul.f32 %v912_v11, %v636_v6  ;;  %vm654_vm9 = vweird.f32 %v912_v11 }
 0x238   : > { %vm655_vm12 = vmor %vm653_vm11, %vm654_vm9 }
 0x239   : > { %v646_v15 = vsel %vm645_vm8, %v910_v5, %v642_v12  ;;  %v649_v16 = vmul.f32 %v912_v11, %v648_v13 }
 0x23a   : > { %v657_v18 = vmul.f32 %v646_v15, %v623_v56 }
 0x23b   : > { %v650_v19 = vmul.f32 0.5, %v649_v16 }
 0x23c   : > { %v663_v20 = vmul.f32 %v905_v14, %v657_v18 }
 0x23d   : > { %v651_v21 = vsub.f32 1.5, %v650_v19 }
 0x23e   : > { %v669_v22 = vadd.f32 %v906_v17, %v663_v20 }
 0x23f   : > { %v652_v23 = vmul.f32 %v912_v11, %v651_v21 }
 0x240   : > { %v671_v24 = vpack.c.bf16 %v669_v22, %v669_v22 }
 0x241   : > { %v656_v25 = vsel %vm655_vm12, %v912_v11, %v652_v23 }
 0x242   : > { %674 = vst.msk [vmem:[%s1087_s8] sm:$0xf] %vm673_vm10, %v671_v24  ;;  %v658_v26 = vmul.f32 %v656_v25, %v624_v61 }
 0x244   : > { %v664_v27 = vmul.f32 %v905_v14, %v658_v26 }
 0x246   : > { %v670_v28 = vadd.f32 %v906_v17, %v664_v27 }
 0x248   : > { %v672_v29 = vpack.c.bf16 %v670_v28, %v670_v28 }
 0x24a   : > { %675 = vst.msk [vmem:[%s1087_s8 + $0x4] sm:$0xf] %vm673_vm10, %v672_v29 }
 0x24b PF: > { %s18_s29 = sadd.s32 1, %s935_s29   ;;  %s1088_s27 = smov %s931_s28 }
 0x24c   : > { %p15_p7 = scmp.ge.s32.totalorder %s18_s29, 6   ;;  %s1089_s28 = smov %s1091_s30 }
 0x24e   :  { %17 = sbr.rel (!%p15_p7) target bundleno = 2 (0x2), region = 105 }

// kernel: transformer_forward.41
= control target key start
LH: loop header
LB: loop body
LE: loop exit
PB: predicated region body
PF: predicated region fallthrough
CT: control target
= control target key end

     0   :  { %s915_s21 = smov 0   ;;  %s917_s22 = smov 0   ;;  %s1024_s0 = inlined_call_operand.vmem [shape: bf16[2,8,32], index: 0, kind: input, shape index: {}]   ;;  %s1025_s1 = inlined_call_operand.vmem [shape: bf16[2,8,64], index: 1, kind: input, shape index: {}]   ;;  %s1026_s2 = inlined_call_operand.vmem [shape: f32[8,32], index: 2, kind: input, shape index: {}, may-alias: {2,4}]   ;;  %s1027_s3 = inlined_call_operand.vmem [shape: f32[8,32], index: 3, kind: input, shape index: {}, may-alias: {3,5}]   ;;  %s1028_s4 = inlined_call_operand.vmem [shape: f32[8,32], index: 4, kind: input, shape index: {}, may-alias: {2,4}]   ;;  %s1029_s5 = inlined_call_operand.vmem [shape: f32[8,32], index: 5, kind: input, shape index: {}, may-alias: {3,5}]   ;;  %s1030_s6 = inlined_call_operand.vmem [shape: bf16[2,8,32], index: 6, kind: output, shape index: {}]  }
   0x1   :  { %s919_s23 = smov 0  }
   0x2 LB: > { %s28_s24 = sadd.s32 1, %s862_s22  ;;  %p778_p0 = scmp.ge.s32.totalorder %s866_s23, 1  ;;  %s866_s23 = sphi %s919_s23, %s16_s23   ;;  %s862_s22 = sphi %s917_s22, %s1032_s22   ;;  %s858_s21 = sphi %s915_s21, %s1031_s21  }
   0x3   : > { %p30_p1 = scmp.ge.s32.totalorder %s28_s24, 2  ;;  %p257_p2 = scmp.lt.s32.totalorder %s866_s23, 3 }
   0x5   : > { %s1034_s24 = smov (%p30_p1, %s28_s24), 0  ;;  %p258_p3 = pnand %p778_p0, %p257_p2 }
   0x6   : > { %p303_p4 = scmp.lt.s32.totalorder (!%p258_p3), %s858_s21, 1  ;;  %s868_s8 = smov (!%p258_p3), 124  }
   0x7   : > { %261 = sbr.rel (%p258_p3) target bundleno = 1208 (0x4b8), region = 44  ;;  %s869_s9 = smov (!%p258_p3), 4  }
   0x8   : > { %s870_s18 = smov (!%p258_p3), 120   ;;  %s871_s19 = smov (!%p258_p3), 96  }
   0x9   : > { %s872_s20 = smov (!%p258_p3), 112   ;;  %s875_s29 = smov (!%p258_p3), 80  }
   0xa   : > { %s876_s30 = smov (!%p258_p3), 72  }
   0xc   : > { %s1036_s21 = smov (!%p303_p4, %s858_s21), 1  ;;  %vm345_vm0 = vcmask 31744   ;;  %vm347_vm1 = vcmask 64512   ;;  %vm349_vm2 = vcmask 97280   ;;  %vm351_vm3 = vcmask 130048   ;;  %v362_v16 = vld [vmem:[%s1028_s4] sm:$0xff] }
   0xd   : > { %s933_s25 = sshll.u32 %s1036_s21, 2  ;;  %vm353_vm4 = vcmask 162816   ;;  %vm355_vm5 = vcmask 195584   ;;  %v333_v17 = vld [vmem:[%s1026_s2] sm:$0xff]  ;;  %vm357_vm6 = vcmask 228352   ;;  %vm434_vm7 = vcmask 1043456  }
   0xe   : > { %s313_s28 = scalar_lea.vmem %s1025_s1, %s933_s25  ;;  %s309_s7 = scalar_lea.vmem %s1024_s0, %s933_s25  ;;  %v334_v21 = vld [vmem:[%s1027_s3] sm:$0xff]  ;;  %v386_v44 = vlaneseq  ;;  %vm452_vm9 = vcmask 60416   ;;  %vm523_vm10 = vcmask 126016   ;;  %vm588_vm11 = vcmask 191616  }
   0xf   : > { %v330_v0 = vld [vmem:[%s313_s28] sm:$0xf]  ;;  %s873_s21 = smov 104   ;;  %s993_s28 = scalar_lea.vmem %s1030_s6, %s933_s25  ;;  %vm653_vm12 = vcmask 257216  }
  0x10   : > { %v331_v1 = vld [vmem:[%s309_s7] sm:$0xf]  ;;  %v361_v2 = vunpack.c.l.bf16 %v330_v0  ;;  %v427_v39 = vunpack.c.l.b16 %v330_v0  ;;  %v963_v47 = vshrl.u32 %v386_v44, 7  ;;  %v965_v48 = vand.u32 127, %v386_v44  ;;  %s874_s25 = smov 88   ;;  %s877_s7 = smov 8  }
  0x11   : > { %v332_v3 = vunpack.c.l.bf16 %v331_v1  ;;  %v363_v23 = vld [vmem:[%s1029_s5] sm:$0xff] }
  0x12   : > { %v364_v4 = vsub.f32 0.0, %v361_v2  ;;  %v365_v25 = vmul.f32 %v362_v16, %v361_v2  ;;  %v959_v40 = vpack.c.b16 %v427_v39, %v427_v39  ;;  %vm392_vm8 = vcmp.gt.s32.totalorder %v965_v48, %v963_v47 }
  0x13   : > { %v335_v5 = vsub.f32 0.0, %v332_v3  ;;  %v336_v27 = vmul.f32 %v333_v17, %v332_v3 }
  0x14   : > { %367 = vrot.lane.b32.xlu0 %v364_v4, %s868_s8 }
  0x15   : > { %338 = vrot.lane.b32.xlu1 %v335_v5, %s868_s8  ;;  %s878_s8 = smov 16  }
  0x1c   : > { %371 = vrot.lane.b32.xlu0 %v361_v2, %s869_s9 }
  0x1d   : > { %342 = vrot.lane.b32.xlu1 %v332_v3, %s869_s9  ;;  %s879_s9 = smov 24  }
  0x86   : > { %v368_v6 = vpop.permute.xlu0 %367 }
  0x87   : > { %v339_v7 = vpop.permute.xlu1 %338 }
  0x8e   : > { %v372_v8 = vpop.permute.xlu0 %371 }
  0x8f   : > { %v343_v9 = vpop.permute.xlu1 %342  ;;  %v374_v10 = vsel %vm345_vm0, %v368_v6, %v372_v8 }
  0x90   : > { %v346_v11 = vsel %vm345_vm0, %v339_v7, %v343_v9  ;;  %v375_v12 = vsel %vm347_vm1, %v374_v10, %v368_v6 }
  0x91   : > { %v348_v13 = vsel %vm347_vm1, %v346_v11, %v339_v7  ;;  %v376_v14 = vsel %vm349_vm2, %v375_v12, %v372_v8 }
  0x92   : > { %v350_v15 = vsel %vm349_vm2, %v348_v13, %v343_v9  ;;  %v377_v18 = vsel %vm351_vm3, %v376_v14, %v368_v6 }
  0x93   : > { %v352_v19 = vsel %vm351_vm3, %v350_v15, %v339_v7  ;;  %v378_v20 = vsel %vm353_vm4, %v377_v18, %v372_v8 }
  0x94   : > { %v354_v22 = vsel %vm353_vm4, %v352_v19, %v343_v9  ;;  %v379_v26 = vsel %vm355_vm5, %v378_v20, %v368_v6 }
  0x95   : > { %v356_v24 = vsel %vm355_vm5, %v354_v22, %v339_v7  ;;  %v380_v29 = vsel %vm357_vm6, %v379_v26, %v372_v8 }
  0x96   : > { %v358_v28 = vsel %vm357_vm6, %v356_v24, %v343_v9  ;;  %v381_v31 = vmul.f32 %v380_v29, %v363_v23 }
  0x97   : > { %v359_v30 = vmul.f32 %v358_v28, %v334_v21 }
  0x98   : > { %v382_v32 = vadd.f32 %v381_v31, %v365_v25 }
  0x99   : > { %v360_v33 = vadd.f32 %v359_v30, %v336_v27 }
  0x9a   : > { %v384_v34 = vpack.c.bf16 %v382_v32, %v382_v32 }
  0x9b   : > { %v383_v35 = vpack.c.bf16 %v360_v33, %v360_v33 }
  0x9c   : > { %v397_v36 = vsel %vm347_vm1, %v384_v34, 0  ;;  %v460_v41 = vunpack.c.l.b16 %v384_v34 }
  0x9d   : > { %v455_v37 = vunpack.c.l.b16 %v383_v35  ;;  %406 = vmatpush.bf16.xpose.msra.mxu0 %v397_v36 }
  0x9e   : > { %v461_v42 = vpack.c.b16 %v460_v41, %v460_v41 }
  0x9f   : > { %v456_v38 = vpack.c.b16 %v455_v37, %v455_v37 }
  0xa1   : > { %457 = vrot.lane.b32.xlu1 %v456_v38, %s870_s18 }
  0xa4   : > { %782 = vmatmul.msk.bf16.vlgmr.msra.gmra.mxu0 %vm347_vm1, %v383_v35 }
  0xa9   : > { %429 = vrot.lane.b32.xlu1 %v959_v40, %s871_s19 }
  0xb1   : > { %527 = vrot.lane.b32.xlu1 %v461_v42, %s872_s20 }
  0xb9   : > { %525 = vrot.lane.b32.xlu1 %v456_v38, %s872_s20 }
 0x113   : > { %v458_v43 = vpop.permute.xlu1 %457 }
 0x11b   : > { %v430_v45 = vpop.permute.xlu1 %429 }
 0x11c   : > { %v436_v46 = vsel %vm434_vm7, %v430_v45, 0 }
 0x11d   : > { %445 = vmatpush.bf16.msra.mxu1 %v436_v46 }
 0x121   : > { %v408_v49 = vpop.f32.mrf.mxu0 }
 0x122   : > { %v412_v50 = vmul.f32 0.35355338, %v408_v49 }
 0x123   : > { %v528_v51 = vpop.permute.xlu1 %527 }
 0x124   : > { %v533_v52 = vsel %vm347_vm1, %v528_v51, 0  ;;  %v413_v53 = vsel %vm392_vm8, -1e+30, %v412_v50 }
 0x125   : > { %542 = vmatpush.bf16.xpose.msrb.mxu1 %v533_v52  ;;  %v414_v54 = vsel %vm347_vm1, %v413_v53, -inf }
 0x126   : > { %415 = vmax.xlane.f32.xlu2 %v414_v54 }
 0x129   : > { %v410_v55 = vpop.f32.mrf.mxu0 }
 0x12b   : > { %v526_v14 = vpop.permute.xlu1 %525 }
 0x13e   : > { %462 = vrot.lane.b32.xlu2 %v461_v42, %s870_s18 }
 0x146   : > { %592 = vrot.lane.b32.xlu2 %v461_v42, %s873_s21 }
 0x14e   : > { %590 = vrot.lane.b32.xlu2 %v456_v38, %s873_s21 }
 0x199   : > { %v416_v56 = vpop.xlane.xlu2 %415 }
 0x19a   : > { %v417_v57 = vsub.f32 %v413_v53, %v416_v56 }
 0x19c   : > { %v418_v58 = vmul.f32 1.442695, %v417_v57 }
 0x19e   : > { %828 = vpow2.f32 %v418_v58 }
 0x1a1   : > { %v463_v59 = vpop.permute.xlu2 %462 }
 0x1a2   : > { %v468_v60 = vsel %vm347_vm1, %v463_v59, 0 }
 0x1a3   : > { %477 = vmatpush.bf16.xpose.msra.mxu2 %v468_v60 }
 0x1a4   : > { %v829_v61 = vpop.eup %828 }
 0x1a5   : > { %v420_v62 = vsel %vm347_vm1, %v829_v61, 0.0 }
 0x1a6   : > { %421 = vadd.xlane.f32.xlu0 %v420_v62 }
 0x1a9   : > { %v593_v63 = vpop.permute.xlu2 %592 }
 0x1aa   : > { %784 = vmatmul.msk.bf16.vlgmr.msra.gmra.mxu2 %vm347_vm1, %v458_v43  ;;  %v598_v0 = vsel %vm347_vm1, %v593_v63, 0 }
 0x1ab   : > { %607 = vmatpush.bf16.xpose.msrb.mxu0 %v598_v0 }
 0x1b1   : > { %v591_v1 = vpop.permute.xlu2 %590 }
 0x1b2   : > { %788 = vmatmul.msk.bf16.vlgmr.msrb.gmra.mxu0 %vm347_vm1, %v591_v1 }
 0x219   : > { %v422_v2 = vpop.xlane.xlu0 %421 }
 0x21a   : > { %830 = vrcp.f32 %v422_v2 }
 0x220   : > { %v831_v3 = vpop.eup %830 }
 0x221   : > { %v424_v4 = vmul.f32 %v831_v3, %v829_v61 }
 0x223   : > { %v425_v5 = vpack.c.bf16 %v424_v4, %v424_v4 }
 0x225   : > { %783 = vmatmul.msk.bf16.vlgmr.msra.gmra.mxu1 %vm347_vm1, %v425_v5 }
 0x22d   : > { %v479_v6 = vpop.f32.mrf.mxu2 }
 0x22e   : > { %v483_v7 = vmul.f32 0.35355338, %v479_v6 }
 0x22f   : > { %v609_v8 = vpop.f32.mrf.mxu0 }
 0x230   : > { %v613_v9 = vmul.f32 0.35355338, %v609_v8  ;;  %v484_v10 = vsel %vm392_vm8, -1e+30, %v483_v7 }
 0x231   : > { %v485_v11 = vsel %vm347_vm1, %v484_v10, -inf }
 0x232   : > { %486 = vmax.xlane.f32.xlu1 %v485_v11  ;;  %v614_v12 = vsel %vm392_vm8, -1e+30, %v613_v9 }
 0x233   : > { %v615_v13 = vsel %vm347_vm1, %v614_v12, -inf }
 0x234   : > { %616 = vmax.xlane.f32.xlu0 %v615_v13 }
 0x235   : > { %v481_v15 = vpop.f32.mrf.mxu2  ;;  %786 = vmatmul.msk.bf16.vlgmr.msrb.gmra.mxu1 %vm347_vm1, %v526_v14 }
 0x237   : > { %v611_v16 = vpop.f32.mrf.mxu0 }
 0x2a2   : > { %v447_v17 = vpop.f32.mrf.mxu1 }
 0x2a3   : > { %v451_v18 = vpack.c.bf16 %v447_v17, %v447_v17 }
 0x2a5   : > { %453 = vst.msk [vmem:[%s993_s28] sm:$0xf] %vm452_vm9, %v451_v18  ;;  %v487_v19 = vpop.xlane.xlu1 %486 }
 0x2a6   : > { %v488_v20 = vsub.f32 %v484_v10, %v487_v19 }
 0x2a7   : > { %v617_v21 = vpop.xlane.xlu0 %616 }
 0x2a8   : > { %v489_v22 = vmul.f32 1.442695, %v488_v20  ;;  %v618_v23 = vsub.f32 %v614_v12, %v617_v21 }
 0x2aa   : > { %832 = vpow2.f32 %v489_v22  ;;  %v619_v24 = vmul.f32 1.442695, %v618_v23  ;;  %v449_v25 = vpop.f32.mrf.mxu1 }
 0x2ac   : > { %834 = vpow2.f32 %v619_v24 }
 0x2b0   : > { %v833_v26 = vpop.eup %832 }
 0x2b1   : > { %v491_v27 = vsel %vm347_vm1, %v833_v26, 0.0 }
 0x2b2   : > { %v835_v28 = vpop.eup %834  ;;  %v544_v29 = vpop.f32.mrf.mxu1  ;;  %492 = vadd.xlane.f32.xlu0 %v491_v27 }
 0x2b3   : > { %v548_v30 = vmul.f32 0.35355338, %v544_v29  ;;  %v621_v31 = vsel %vm347_vm1, %v835_v28, 0.0 }
 0x2b4   : > { %622 = vadd.xlane.f32.xlu1 %v621_v31 }
 0x2b5   : > { %v549_v32 = vsel %vm392_vm8, -1e+30, %v548_v30 }
 0x2b6   : > { %v550_v33 = vsel %vm347_vm1, %v549_v32, -inf }
 0x2b7   : > { %551 = vmax.xlane.f32.xlu2 %v550_v33 }
 0x2ba   : > { %v546_v34 = vpop.f32.mrf.mxu1 }
 0x2c6   : > { %497 = vrot.lane.b32.xlu0 %v959_v40, %s874_s25 }
 0x2ce   : > { %562 = vrot.lane.b32.xlu0 %v959_v40, %s875_s29 }
 0x325   : > { %v493_v36 = vpop.xlane.xlu0 %492 }
 0x326   : > { %836 = vrcp.f32 %v493_v36 }
 0x327   : > { %v623_v49 = vpop.xlane.xlu1 %622 }
 0x32a   : > { %v552_v35 = vpop.xlane.xlu2 %551 }
 0x32b   : > { %v553_v37 = vsub.f32 %v549_v32, %v552_v35 }
 0x32c   : > { %v837_v39 = vpop.eup %836 }
 0x32d   : > { %v554_v38 = vmul.f32 1.442695, %v553_v37  ;;  %v495_v43 = vmul.f32 %v837_v39, %v833_v26 }
 0x32f   : > { %838 = vpow2.f32 %v554_v38  ;;  %v496_v46 = vpack.c.bf16 %v495_v43, %v495_v43 }
 0x330   : > { %840 = vrcp.f32 %v623_v49 }
 0x335   : > { %v839_v41 = vpop.eup %838 }
 0x336   : > { %v556_v42 = vsel %vm347_vm1, %v839_v41, 0.0  ;;  %v841_v51 = vpop.eup %840 }
 0x337   : > { %557 = vadd.xlane.f32.xlu2 %v556_v42  ;;  %v625_v53 = vmul.f32 %v841_v51, %v835_v28 }
 0x338   : > { %v498_v44 = vpop.permute.xlu0 %497 }
 0x339   : > { %v503_v45 = vsel %vm434_vm7, %v498_v44, 0  ;;  %v626_v58 = vpack.c.bf16 %v625_v53, %v625_v53 }
 0x33a   : > { %512 = vmatpush.bf16.msra.mxu3 %v503_v45 }
 0x33d   : > { %785 = vmatmul.msk.bf16.vlgmr.msra.gmra.mxu3 %vm347_vm1, %v496_v46 }
 0x340   : > { %v563_v47 = vpop.permute.xlu0 %562 }
 0x341   : > { %v568_v48 = vsel %vm434_vm7, %v563_v47, 0 }
 0x342   : > { %577 = vmatpush.bf16.msrb.mxu3 %v568_v48 }
 0x34f   : > { %627 = vrot.lane.b32.xlu2 %v959_v40, %s876_s30 }
 0x3aa   : > { %v558_v50 = vpop.xlane.xlu2 %557 }
 0x3ab   : > { %842 = vrcp.f32 %v558_v50 }
 0x3b1   : > { %v843_v52 = vpop.eup %842 }
 0x3b2   : > { %v560_v54 = vmul.f32 %v843_v52, %v839_v41  ;;  %v628_v55 = vpop.permute.xlu2 %627 }
 0x3b3   : > { %v633_v56 = vsel %vm434_vm7, %v628_v55, 0 }
 0x3b4   : > { %642 = vmatpush.bf16.msrb.mxu2 %v633_v56  ;;  %v561_v57 = vpack.c.bf16 %v560_v54, %v560_v54 }
 0x3b6   : > { %787 = vmatmul.msk.bf16.vlgmr.msrb.gmra.mxu3 %vm347_vm1, %v561_v57 }
 0x3b7   : > { %789 = vmatmul.msk.bf16.vlgmr.msrb.gmra.mxu2 %vm347_vm1, %v626_v58 }
 0x3c0   : > { %v514_v40 = vpop.f32.mrf.mxu3 }
 0x3c1   : > { %v518_v59 = vpack.c.bf16 %v514_v40, %v514_v40 }
 0x3c3   : > { %520 = vrot.lane.b32.xlu1 %v518_v59, %s877_s7 }
 0x3c8   : > { %v516_v60 = vpop.f32.mrf.mxu3 }
 0x435   : > { %v521_v61 = vpop.permute.xlu1 %520 }
 0x436   : > { %524 = vst.msk [vmem:[%s993_s28] sm:$0xf] %vm523_vm10, %v521_v61 }
 0x439   : > { %v579_v62 = vpop.f32.mrf.mxu3 }
 0x43a   : > { %v583_v63 = vpack.c.bf16 %v579_v62, %v579_v62  ;;  %v644_v0 = vpop.f32.mrf.mxu2 }
 0x43b   : > { %v648_v2 = vpack.c.bf16 %v644_v0, %v644_v0 }
 0x43c   : > { %585 = vrot.lane.b32.xlu0 %v583_v63, %s878_s8 }
 0x441   : > { %v581_v1 = vpop.f32.mrf.mxu3 }
 0x442   : > { %v646_v3 = vpop.f32.mrf.mxu2 }
 0x444   : > { %650 = vrot.lane.b32.xlu0 %v648_v2, %s879_s9 }
 0x4ae   : > { %v586_v4 = vpop.permute.xlu0 %585 }
 0x4af   : > { %589 = vst.msk [vmem:[%s993_s28] sm:$0xf] %vm588_vm11, %v586_v4 }
 0x4b6   : > { %v651_v5 = vpop.permute.xlu0 %650 }
 0x4b7   : > { %654 = vst.msk [vmem:[%s993_s28] sm:$0xf] %vm653_vm12, %v651_v5 }
 0x4b8 PF: > { %s16_s23 = sadd.s32 1, %s866_s23   ;;  %s1031_s21 = smov %s862_s22 }
 0x4b9   : > { %p13_p5 = scmp.ge.s32.totalorder %s16_s23, 4   ;;  %s1032_s22 = smov %s1034_s24 }
 0x4bb   :  { %15 = sbr.rel (!%p13_p5) target bundleno = 2 (0x2), region = 83 }

</bundles_post_ra>
